<compile_context>
chip_gen: v7x
topology: tpu7x:2x2x1
jax: 0.10.0
libtpu: 0.0.40
codegen_flags: <defaults>
</compile_context>

<pallas_src>
import functools
import math

import jax
import jax.numpy as jnp
from jax import lax
from jax.experimental import pallas as pl
from jax.experimental.pallas import tpu as pltpu

EPS = 1e-5      # layer_norm_eps of myTransformerDecoderLayer
NEG_INF = -1e9  # finite additive mask value (avoids NaN from -inf - (-inf))

# Row layout of the per-layer packed f32 "vector" blob (biases + layer-norm params).
ROW_SA_BQKV, ROW_SA_BO = 0, 1
ROW_CA_BQKV, ROW_CA_BO = 2, 3
ROW_FF_B1, ROW_FF_B2 = 4, 5
ROW_N1G, ROW_N1B = 6, 7
ROW_N2G, ROW_N2B = 8, 9
ROW_N3G, ROW_N3B = 10, 11
NUM_VEC_ROWS = 12


def _gelu(x):
    # exact (erf based) gelu, matching F.gelu default
    return 0.5 * x * (1.0 + lax.erf(x * (1.0 / math.sqrt(2.0))))


def decoder_kernel(nhead, tgt_ref, mem_ref, mask_ref,
                   attn_w_ref, w1_ref, w2_ref, vec_ref,
                   out_ref, x_ref):
    """One grid step = (one batch element, one decoder layer)."""
    layer = pl.program_id(1)
    T, D = tgt_ref.shape
    S = mem_ref.shape[0]
    H = nhead
    dh = D // H

    # Layer 0: load this batch element's decoder input into the resident activation.
    @pl.when(layer == 0)
    def _():
        x_ref[...] = tgt_ref[...]

    x = x_ref[...]              # (T, D) f32
    mem = mem_ref[...]          # (S, D) f32
    mem_mask = mask_ref[0]      # (1, S) additive float key-padding mask

    def vrow(row, width):
        return vec_ref[0, row:row + 1, 0:width]           # (1, width) f32

    def layer_norm(y, g_row, b_row):
        mean = jnp.mean(y, axis=-1, keepdims=True)
        var = jnp.mean((y - mean) ** 2, axis=-1, keepdims=True)
        return (y - mean) * lax.rsqrt(var + EPS) * vrow(g_row, D) + vrow(b_row, D)

    def attention(q, k, v, wo, bo, add_mask):
        # q: (Tq, D), k/v: (Sk, D) f32, heads laid out contiguously on lanes.
        # Per-head scores/softmax/PV (shapes are inherently per-head); heads are
        # concatenated back on lanes and projected with a single (Tq,D)@(D,D) matmul.
        outs = []
        for h in range(H):
            sl = slice(h * dh, (h + 1) * dh)
            s = jnp.einsum('td,sd->ts', q[:, sl], k[:, sl],
                           preferred_element_type=jnp.float32)
            if add_mask is not None:
                s = s + add_mask
            s = s - jnp.max(s, axis=-1, keepdims=True)
            p = jnp.exp(s)
            p = p * pl.reciprocal(jnp.sum(p, axis=-1, keepdims=True))
            outs.append(jnp.dot(p, v[:, sl], preferred_element_type=jnp.float32))
        o = jnp.concatenate(outs, axis=-1)                 # (Tq, D)
        return jnp.dot(o.astype(wo.dtype), wo,
                       preferred_element_type=jnp.float32) + bo

    # --- self-attention block (tgt_mask=None), post-norm ---
    aw_sa = attn_w_ref[0, 0]                               # (D, 4D) bf16: [Wqkv | Wout]
    qkv = jnp.dot(x.astype(aw_sa.dtype), aw_sa[:, 0:3 * D],
                  preferred_element_type=jnp.float32) + vrow(ROW_SA_BQKV, 3 * D)
    sa = attention(qkv[:, 0:D], qkv[:, D:2 * D], qkv[:, 2 * D:3 * D],
                   aw_sa[:, 3 * D:4 * D], vrow(ROW_SA_BO, D), None)
    x = layer_norm(x + sa, ROW_N1G, ROW_N1B)

    # --- cross-attention block (memory key-padding mask) ---
    aw_ca = attn_w_ref[0, 1]                               # (D, 4D) bf16
    b_ca = vrow(ROW_CA_BQKV, 3 * D)                        # (1, 3D)
    qc = jnp.dot(x.astype(aw_ca.dtype), aw_ca[:, 0:D],
                 preferred_element_type=jnp.float32) + b_ca[:, 0:D]
    kv = jnp.dot(mem.astype(aw_ca.dtype), aw_ca[:, D:3 * D],
                 preferred_element_type=jnp.float32) + b_ca[:, D:3 * D]
    ca = attention(qc, kv[:, 0:D], kv[:, D:2 * D],
                   aw_ca[:, 3 * D:4 * D], vrow(ROW_CA_BO, D), mem_mask)
    x = layer_norm(x + ca, ROW_N2G, ROW_N2B)

    # --- feed-forward block ---
    w1 = w1_ref[0]                                         # (D, F) bf16
    w2 = w2_ref[0]                                         # (F, D) bf16
    F = w1.shape[-1]
    h1 = _gelu(jnp.dot(x.astype(w1.dtype), w1,
                       preferred_element_type=jnp.float32) + vrow(ROW_FF_B1, F))
    ff = jnp.dot(h1.astype(w2.dtype), w2,
                 preferred_element_type=jnp.float32) + vrow(ROW_FF_B2, D)
    x = layer_norm(x + ff, ROW_N3G, ROW_N3B)

    x_ref[...] = x

    # Resident output block: write it only on the last layer step for this batch elem.
    @pl.when(layer == pl.num_programs(1) - 1)
    def _():
        out_ref[...] = x


@functools.partial(jax.jit, static_argnames=("nhead",))
def decoder_forward(tgt, memory, memory_key_padding_mask, params, nhead):
    """Equivalent to Decoder.forward(tgt, memory, memory_key_padding_mask)."""
    B, T, D = tgt.shape
    S = memory.shape[1]
    attn_w, w1s, w2s, vecs = params
    L = attn_w.shape[0]
    F = w1s.shape[-1]

    # Flatten activations in XLA (free) so the kernel sees lane-dense 2-D tiles.
    tgt2 = tgt.reshape(B * T, D).astype(jnp.float32)
    mem2 = memory.reshape(B * S, D).astype(jnp.float32)
    # boolean key-padding mask (True == pad) -> additive finite float mask (B, 1, S)
    mask_add = jnp.where(memory_key_padding_mask, NEG_INF, 0.0)
    mask_add = mask_add.astype(jnp.float32).reshape(B, 1, S)

    # Explicit VMEM budget: resident blocks + double-buffered streamed layer weights.
    per_layer_bytes = (attn_w.nbytes + w1s.nbytes + w2s.nbytes + vecs.nbytes) // L
    resident_bytes = (3 * T * D + S * D) * 4 + 8 * 128 * 4
    vmem_limit = int(min(max(4 * resident_bytes + 4 * per_layer_bytes + (8 << 20),
                             32 << 20), 64 << 20))

    in_specs = [
        pl.BlockSpec((T, D), lambda b, l: (b, 0)),            # tgt rows for batch b
        pl.BlockSpec((S, D), lambda b, l: (b, 0)),            # memory rows for batch b
        pl.BlockSpec((1, 1, S), lambda b, l: (b, 0, 0)),      # additive mask for batch b
        pl.BlockSpec((1, 2, D, 4 * D), lambda b, l: (l, 0, 0, 0)),   # attn weights (bf16)
        pl.BlockSpec((1, D, F), lambda b, l: (l, 0, 0)),             # ffn w1 (bf16)
        pl.BlockSpec((1, F, D), lambda b, l: (l, 0, 0)),             # ffn w2 (bf16)
        pl.BlockSpec((1, NUM_VEC_ROWS, vecs.shape[-1]), lambda b, l: (l, 0, 0)),  # biases/norms
    ]

    out = pl.pallas_call(
        functools.partial(decoder_kernel, nhead),
        grid=(B, L),
        in_specs=in_specs,
        out_specs=pl.BlockSpec((T, D), lambda b, l: (b, 0)),
        out_shape=jax.ShapeDtypeStruct((B * T, D), jnp.float32),
        scratch_shapes=[pltpu.VMEM((T, D), jnp.float32)],      # resident activation
        compiler_params=pltpu.CompilerParams(
            dimension_semantics=("parallel", "arbitrary"),
            vmem_limit_bytes=vmem_limit),
    )(tgt2, mem2, mask_add, attn_w, w1s, w2s, vecs)
    return out.reshape(B, T, D)


# ----------------------- parameter construction / packing -----------------------

def init_torch_style_layer(key, d_model, dim_ff):
    """Random parameters in PyTorch's native layouts (in_proj_weight etc.)."""
    D, F = d_model, dim_ff
    ks = jax.random.split(key, 10)
    s = 0.05
    return {
        'sa_in_w': s * jax.random.normal(ks[0], (3 * D, D), jnp.float32),
        'sa_in_b': s * jax.random.normal(ks[1], (3 * D,), jnp.float32),
        'sa_out_w': s * jax.random.normal(ks[2], (D, D), jnp.float32),
        'sa_out_b': s * jax.random.normal(ks[3], (D,), jnp.float32),
        'ca_in_w': s * jax.random.normal(ks[4], (3 * D, D), jnp.float32),
        'ca_in_b': s * jax.random.normal(ks[5], (3 * D,), jnp.float32),
        'ca_out_w': s * jax.random.normal(ks[6], (D, D), jnp.float32),
        'ca_out_b': s * jax.random.normal(ks[7], (D,), jnp.float32),
        'l1_w': s * jax.random.normal(ks[8], (F, D), jnp.float32),
        'l1_b': jnp.zeros((F,), jnp.float32),
        'l2_w': s * jax.random.normal(ks[9], (D, F), jnp.float32),
        'l2_b': jnp.zeros((D,), jnp.float32),
        'n1_g': jnp.ones((D,), jnp.float32), 'n1_b': jnp.zeros((D,), jnp.float32),
        'n2_g': jnp.ones((D,), jnp.float32), 'n2_b': jnp.zeros((D,), jnp.float32),
        'n3_g': jnp.ones((D,), jnp.float32), 'n3_b': jnp.zeros((D,), jnp.float32),
    }


def pack_layer_params(p, nhead):
    """PyTorch layouts -> 4 coalesced per-layer blobs (bf16 weights, f32 vectors)."""
    D = p['n1_g'].shape[0]
    F = p['l1_b'].shape[0]
    dh = D // nhead
    scale = 1.0 / math.sqrt(dh)

    def pack_attn(in_w, in_b, out_w):
        # x @ [Wq*scale | Wk | Wv | Wout^T]  (all transposed for right-multiplication)
        w = jnp.concatenate([in_w[:D].T * scale, in_w[D:2 * D].T, in_w[2 * D:].T,
                             out_w.T], axis=1)                           # (D, 4D)
        b = jnp.concatenate([in_b[:D] * scale, in_b[D:2 * D], in_b[2 * D:]])  # (3D,)
        return w, b

    sa_w, sa_b = pack_attn(p['sa_in_w'], p['sa_in_b'], p['sa_out_w'])
    ca_w, ca_b = pack_attn(p['ca_in_w'], p['ca_in_b'], p['ca_out_w'])
    attn_w = jnp.stack([sa_w, ca_w], axis=0).astype(jnp.bfloat16)        # (2, D, 4D)

    w1 = p['l1_w'].T.astype(jnp.bfloat16)                                # (D, F)
    w2 = p['l2_w'].T.astype(jnp.bfloat16)                                # (F, D)

    vw = max(3 * D, F)

    def row(v):
        v = jnp.asarray(v, jnp.float32)
        return jnp.pad(v, (0, vw - v.shape[0]))

    vecs = jnp.stack([
        row(sa_b), row(p['sa_out_b']),
        row(ca_b), row(p['ca_out_b']),
        row(p['l1_b']), row(p['l2_b']),
        row(p['n1_g']), row(p['n1_b']),
        row(p['n2_g']), row(p['n2_b']),
        row(p['n3_g']), row(p['n3_b']),
    ], axis=0)                                                           # (12, vw) f32
    return attn_w, w1, w2, vecs


def stack_layers(layer_tuples):
    n = len(layer_tuples[0])
    return tuple(jnp.stack([lt[i] for lt in layer_tuples], axis=0) for i in range(n))


if __name__ == "__main__":
    num_layers = 2
    d_model = 32
    nhead = 4
    dim_feedforward = 64
    B, T, S = 2, 8, 8

    key = jax.random.PRNGKey(0)
    k_tgt, k_mem, k_layers = jax.random.split(key, 3)

    tgt = jax.random.normal(k_tgt, (B, T, d_model), jnp.float32)
    memory = jax.random.normal(k_mem, (B, S, d_model), jnp.float32)
    # memory key padding mask: pad the last 2 memory positions of batch element 1
    memory_key_padding_mask = jnp.zeros((B, S), dtype=bool).at[1, -2:].set(True)

    layer_keys = jax.random.split(k_layers, num_layers)
    torch_layers = [init_torch_style_layer(k, d_model, dim_feedforward)
                    for k in layer_keys]
    packed = [pack_layer_params(p, nhead) for p in torch_layers]
    stacked = stack_layers(packed)

    out = decoder_forward(tgt, memory, memory_key_padding_mask, stacked, nhead=nhead)
    out = jax.block_until_ready(out)
    assert out.shape == (B, T, d_model)
    assert bool(jnp.all(jnp.isfinite(out)))
    print("KERNEL_OK")
</pallas_src>

<mosaic_0001>
module attributes {stable_mosaic.version = 11 : i64} {
  func.func @decoder_kernel(%arg0: i32, %arg1: i32, %arg2: memref<8x32xf32, #tpu.memory_space<vmem>>, %arg3: memref<8x32xf32, #tpu.memory_space<vmem>>, %arg4: memref<1x1x8xf32, #tpu.memory_space<vmem>>, %arg5: memref<1x2x32x128xbf16, #tpu.memory_space<vmem>>, %arg6: memref<1x32x64xbf16, #tpu.memory_space<vmem>>, %arg7: memref<1x64x32xbf16, #tpu.memory_space<vmem>>, %arg8: memref<1x12x96xf32, #tpu.memory_space<vmem>>, %arg9: memref<8x32xf32, #tpu.memory_space<vmem>>, %arg10: memref<8x32xf32, #tpu.memory_space<vmem>>) attributes {dimension_semantics = [#tpu.dimension_semantics<parallel>, #tpu.dimension_semantics<arbitrary>], iteration_bounds = array<i64: 2, 2>, scalar_prefetch = 0 : i64, scratch_operands = 1 : i64, tpu.core_type = #tpu.core_type<tc>, window_params = [{transform_indices = @transform_0, window_bounds = array<i64: 8, 32>}, {transform_indices = @transform_1, window_bounds = array<i64: 8, 32>}, {transform_indices = @transform_2, window_bounds = array<i64: 1, 1, 8>}, {transform_indices = @transform_3, window_bounds = array<i64: 1, 2, 32, 128>}, {transform_indices = @transform_4, window_bounds = array<i64: 1, 32, 64>}, {transform_indices = @transform_5, window_bounds = array<i64: 1, 64, 32>}, {transform_indices = @transform_6, window_bounds = array<i64: 1, 12, 96>}, {transform_indices = @transform_7, window_bounds = array<i64: 8, 32>}]} {
    %c0_i32 = arith.constant 0 : i32
    %0 = arith.cmpi eq, %arg1, %c0_i32 : i32
    %1 = arith.extui %0 : i1 to i32
    %c0_i32_0 = arith.constant 0 : i32
    %2 = arith.cmpi ne, %1, %c0_i32_0 : i32
    scf.if %2 {
      %c0_105 = arith.constant 0 : index
      %c0_106 = arith.constant 0 : index
      %290 = vector.load %arg2[%c0_105, %c0_106] : memref<8x32xf32, #tpu.memory_space<vmem>>, vector<8x32xf32>
      %c0_107 = arith.constant 0 : index
      %c0_108 = arith.constant 0 : index
      %291 = vector.load %arg10[%c0_107, %c0_108] : memref<8x32xf32, #tpu.memory_space<vmem>>, vector<8x32xf32>
      tpu.vector_store %arg10[%c0_107, %c0_108], %290 {strides = array<i32>} : memref<8x32xf32, #tpu.memory_space<vmem>>, vector<8x32xf32>,
    } else {
    }
    %c0 = arith.constant 0 : index
    %c0_1 = arith.constant 0 : index
    %3 = vector.load %arg10[%c0, %c0_1] : memref<8x32xf32, #tpu.memory_space<vmem>>, vector<8x32xf32>
    %c0_2 = arith.constant 0 : index
    %c0_3 = arith.constant 0 : index
    %4 = vector.load %arg3[%c0_2, %c0_3] : memref<8x32xf32, #tpu.memory_space<vmem>>, vector<8x32xf32>
    %c0_4 = arith.constant 0 : index
    %c0_5 = arith.constant 0 : index
    %c0_6 = arith.constant 0 : index
    %5 = vector.load %arg4[%c0_4, %c0_5, %c0_6] : memref<1x1x8xf32, #tpu.memory_space<vmem>>, vector<1x1x8xf32>
    %6 = vector.shape_cast %5 : vector<1x1x8xf32> to vector<1x8xf32>
    %c0_7 = arith.constant 0 : index
    %c0_8 = arith.constant 0 : index
    %c0_9 = arith.constant 0 : index
    %c0_10 = arith.constant 0 : index
    %7 = vector.load %arg5[%c0_7, %c0_8, %c0_9, %c0_10] : memref<1x2x32x128xbf16, #tpu.memory_space<vmem>>, vector<1x1x32x128xbf16>
    %8 = vector.shape_cast %7 : vector<1x1x32x128xbf16> to vector<32x128xbf16>
    %9 = arith.truncf %3 : vector<8x32xf32> to vector<8x32xbf16>
    %10 = vector.extract_strided_slice %8 {offsets = [0, 0], sizes = [32, 96], strides = [1, 1]} : vector<32x128xbf16> to vector<32x96xbf16>
    %cst = arith.constant dense<0.000000e+00> : vector<8x96xf32>
    %11 = tpu.matmul %9, %10, %cst {dimension_numbers = #tpu.dot_dimension_numbers<[1], [0], [0], [1], [0, 0, 1, 1], [], []>} : vector<8x32xbf16>, vector<32x96xbf16>, vector<8x96xf32> -> vector<8x96xf32>
    %c0_11 = arith.constant 0 : index
    %c0_12 = arith.constant 0 : index
    %c0_13 = arith.constant 0 : index
    %12 = vector.load %arg8[%c0_11, %c0_12, %c0_13] : memref<1x12x96xf32, #tpu.memory_space<vmem>>, vector<1x1x96xf32>
    %13 = vector.shape_cast %12 : vector<1x1x96xf32> to vector<1x96xf32>
    %14 = vector.broadcast %13 : vector<1x96xf32> to vector<8x96xf32>
    %15 = arith.addf %11, %14 : vector<8x96xf32>
    %16 = vector.extract_strided_slice %15 {offsets = [0, 0], sizes = [8, 32], strides = [1, 1]} : vector<8x96xf32> to vector<8x32xf32>
    %17 = vector.extract_strided_slice %15 {offsets = [0, 32], sizes = [8, 32], strides = [1, 1]} : vector<8x96xf32> to vector<8x32xf32>
    %18 = vector.extract_strided_slice %15 {offsets = [0, 64], sizes = [8, 32], strides = [1, 1]} : vector<8x96xf32> to vector<8x32xf32>
    %19 = vector.extract_strided_slice %8 {offsets = [0, 96], sizes = [32, 32], strides = [1, 1]} : vector<32x128xbf16> to vector<32x32xbf16>
    %c0_14 = arith.constant 0 : index
    %c1 = arith.constant 1 : index
    %c0_15 = arith.constant 0 : index
    %20 = vector.load %arg8[%c0_14, %c1, %c0_15] : memref<1x12x96xf32, #tpu.memory_space<vmem>>, vector<1x1x32xf32>
    %21 = vector.shape_cast %20 : vector<1x1x32xf32> to vector<1x32xf32>
    %22 = vector.extract_strided_slice %16 {offsets = [0, 0], sizes = [8, 8], strides = [1, 1]} : vector<8x32xf32> to vector<8x8xf32>
    %23 = vector.extract_strided_slice %17 {offsets = [0, 0], sizes = [8, 8], strides = [1, 1]} : vector<8x32xf32> to vector<8x8xf32>
    "tpu.trace_start"() <{level = 10 : i32, message = "td,sd->ts"}> : () -> ()
    %cst_16 = arith.constant dense<0.000000e+00> : vector<8x8xf32>
    %24 = tpu.matmul %22, %23, %cst_16 {dimension_numbers = #tpu.dot_dimension_numbers<[1], [1], [0], [0], [0, 0, 1, 0], [], []>} : vector<8x8xf32>, vector<8x8xf32>, vector<8x8xf32> -> vector<8x8xf32>
    "tpu.trace_stop"() : () -> ()
    %cst_17 = arith.constant dense<0xFF800000> : vector<8xf32>
    %25 = vector.multi_reduction <maximumf>, %24, %cst_17 [1] : vector<8x8xf32> to vector<8xf32>
    %26 = vector.shape_cast %25 : vector<8xf32> to vector<8x1xf32>
    %27 = vector.broadcast %26 : vector<8x1xf32> to vector<8x8xf32>
    %28 = arith.subf %24, %27 : vector<8x8xf32>
    %29 = math.exp %28 : vector<8x8xf32>
    %cst_18 = arith.constant dense<0.000000e+00> : vector<8xf32>
    %30 = vector.multi_reduction <add>, %29, %cst_18 [1] : vector<8x8xf32> to vector<8xf32>
    %31 = vector.shape_cast %30 : vector<8xf32> to vector<8x1xf32>
    %32 = tpu.reciprocal %31 : vector<8x1xf32> -> vector<8x1xf32>
    %33 = vector.broadcast %32 : vector<8x1xf32> to vector<8x8xf32>
    %34 = arith.mulf %29, %33 : vector<8x8xf32>
    %35 = vector.extract_strided_slice %18 {offsets = [0, 0], sizes = [8, 8], strides = [1, 1]} : vector<8x32xf32> to vector<8x8xf32>
    %cst_19 = arith.constant dense<0.000000e+00> : vector<8x8xf32>
    %36 = tpu.matmul %34, %35, %cst_19 {dimension_numbers = #tpu.dot_dimension_numbers<[1], [0], [0], [1], [0, 0, 1, 1], [], []>} : vector<8x8xf32>, vector<8x8xf32>, vector<8x8xf32> -> vector<8x8xf32>
    %37 = vector.extract_strided_slice %16 {offsets = [0, 8], sizes = [8, 8], strides = [1, 1]} : vector<8x32xf32> to vector<8x8xf32>
    %38 = vector.extract_strided_slice %17 {offsets = [0, 8], sizes = [8, 8], strides = [1, 1]} : vector<8x32xf32> to vector<8x8xf32>
    "tpu.trace_start"() <{level = 10 : i32, message = "td,sd->ts"}> : () -> ()
    %cst_20 = arith.constant dense<0.000000e+00> : vector<8x8xf32>
    %39 = tpu.matmul %37, %38, %cst_20 {dimension_numbers = #tpu.dot_dimension_numbers<[1], [1], [0], [0], [0, 0, 1, 0], [], []>} : vector<8x8xf32>, vector<8x8xf32>, vector<8x8xf32> -> vector<8x8xf32>
    "tpu.trace_stop"() : () -> ()
    %cst_21 = arith.constant dense<0xFF800000> : vector<8xf32>
    %40 = vector.multi_reduction <maximumf>, %39, %cst_21 [1] : vector<8x8xf32> to vector<8xf32>
    %41 = vector.shape_cast %40 : vector<8xf32> to vector<8x1xf32>
    %42 = vector.broadcast %41 : vector<8x1xf32> to vector<8x8xf32>
    %43 = arith.subf %39, %42 : vector<8x8xf32>
    %44 = math.exp %43 : vector<8x8xf32>
    %cst_22 = arith.constant dense<0.000000e+00> : vector<8xf32>
    %45 = vector.multi_reduction <add>, %44, %cst_22 [1] : vector<8x8xf32> to vector<8xf32>
    %46 = vector.shape_cast %45 : vector<8xf32> to vector<8x1xf32>
    %47 = tpu.reciprocal %46 : vector<8x1xf32> -> vector<8x1xf32>
    %48 = vector.broadcast %47 : vector<8x1xf32> to vector<8x8xf32>
    %49 = arith.mulf %44, %48 : vector<8x8xf32>
    %50 = vector.extract_strided_slice %18 {offsets = [0, 8], sizes = [8, 8], strides = [1, 1]} : vector<8x32xf32> to vector<8x8xf32>
    %cst_23 = arith.constant dense<0.000000e+00> : vector<8x8xf32>
    %51 = tpu.matmul %49, %50, %cst_23 {dimension_numbers = #tpu.dot_dimension_numbers<[1], [0], [0], [1], [0, 0, 1, 1], [], []>} : vector<8x8xf32>, vector<8x8xf32>, vector<8x8xf32> -> vector<8x8xf32>
    %52 = vector.extract_strided_slice %16 {offsets = [0, 16], sizes = [8, 8], strides = [1, 1]} : vector<8x32xf32> to vector<8x8xf32>
    %53 = vector.extract_strided_slice %17 {offsets = [0, 16], sizes = [8, 8], strides = [1, 1]} : vector<8x32xf32> to vector<8x8xf32>
    "tpu.trace_start"() <{level = 10 : i32, message = "td,sd->ts"}> : () -> ()
    %cst_24 = arith.constant dense<0.000000e+00> : vector<8x8xf32>
    %54 = tpu.matmul %52, %53, %cst_24 {dimension_numbers = #tpu.dot_dimension_numbers<[1], [1], [0], [0], [0, 0, 1, 0], [], []>} : vector<8x8xf32>, vector<8x8xf32>, vector<8x8xf32> -> vector<8x8xf32>
    "tpu.trace_stop"() : () -> ()
    %cst_25 = arith.constant dense<0xFF800000> : vector<8xf32>
    %55 = vector.multi_reduction <maximumf>, %54, %cst_25 [1] : vector<8x8xf32> to vector<8xf32>
    %56 = vector.shape_cast %55 : vector<8xf32> to vector<8x1xf32>
    %57 = vector.broadcast %56 : vector<8x1xf32> to vector<8x8xf32>
    %58 = arith.subf %54, %57 : vector<8x8xf32>
    %59 = math.exp %58 : vector<8x8xf32>
    %cst_26 = arith.constant dense<0.000000e+00> : vector<8xf32>
    %60 = vector.multi_reduction <add>, %59, %cst_26 [1] : vector<8x8xf32> to vector<8xf32>
    %61 = vector.shape_cast %60 : vector<8xf32> to vector<8x1xf32>
    %62 = tpu.reciprocal %61 : vector<8x1xf32> -> vector<8x1xf32>
    %63 = vector.broadcast %62 : vector<8x1xf32> to vector<8x8xf32>
    %64 = arith.mulf %59, %63 : vector<8x8xf32>
    %65 = vector.extract_strided_slice %18 {offsets = [0, 16], sizes = [8, 8], strides = [1, 1]} : vector<8x32xf32> to vector<8x8xf32>
    %cst_27 = arith.constant dense<0.000000e+00> : vector<8x8xf32>
    %66 = tpu.matmul %64, %65, %cst_27 {dimension_numbers = #tpu.dot_dimension_numbers<[1], [0], [0], [1], [0, 0, 1, 1], [], []>} : vector<8x8xf32>, vector<8x8xf32>, vector<8x8xf32> -> vector<8x8xf32>
    %67 = vector.extract_strided_slice %16 {offsets = [0, 24], sizes = [8, 8], strides = [1, 1]} : vector<8x32xf32> to vector<8x8xf32>
    %68 = vector.extract_strided_slice %17 {offsets = [0, 24], sizes = [8, 8], strides = [1, 1]} : vector<8x32xf32> to vector<8x8xf32>
    "tpu.trace_start"() <{level = 10 : i32, message = "td,sd->ts"}> : () -> ()
    %cst_28 = arith.constant dense<0.000000e+00> : vector<8x8xf32>
    %69 = tpu.matmul %67, %68, %cst_28 {dimension_numbers = #tpu.dot_dimension_numbers<[1], [1], [0], [0], [0, 0, 1, 0], [], []>} : vector<8x8xf32>, vector<8x8xf32>, vector<8x8xf32> -> vector<8x8xf32>
    "tpu.trace_stop"() : () -> ()
    %cst_29 = arith.constant dense<0xFF800000> : vector<8xf32>
    %70 = vector.multi_reduction <maximumf>, %69, %cst_29 [1] : vector<8x8xf32> to vector<8xf32>
    %71 = vector.shape_cast %70 : vector<8xf32> to vector<8x1xf32>
    %72 = vector.broadcast %71 : vector<8x1xf32> to vector<8x8xf32>
    %73 = arith.subf %69, %72 : vector<8x8xf32>
    %74 = math.exp %73 : vector<8x8xf32>
    %cst_30 = arith.constant dense<0.000000e+00> : vector<8xf32>
    %75 = vector.multi_reduction <add>, %74, %cst_30 [1] : vector<8x8xf32> to vector<8xf32>
    %76 = vector.shape_cast %75 : vector<8xf32> to vector<8x1xf32>
    %77 = tpu.reciprocal %76 : vector<8x1xf32> -> vector<8x1xf32>
    %78 = vector.broadcast %77 : vector<8x1xf32> to vector<8x8xf32>
    %79 = arith.mulf %74, %78 : vector<8x8xf32>
    %80 = vector.extract_strided_slice %18 {offsets = [0, 24], sizes = [8, 8], strides = [1, 1]} : vector<8x32xf32> to vector<8x8xf32>
    %cst_31 = arith.constant dense<0.000000e+00> : vector<8x8xf32>
    %81 = tpu.matmul %79, %80, %cst_31 {dimension_numbers = #tpu.dot_dimension_numbers<[1], [0], [0], [1], [0, 0, 1, 1], [], []>} : vector<8x8xf32>, vector<8x8xf32>, vector<8x8xf32> -> vector<8x8xf32>
    %82 = tpu.concatenate %36, %51, %66, %81 in 1 : vector<8x8xf32>, vector<8x8xf32>, vector<8x8xf32>, vector<8x8xf32> -> vector<8x32xf32>
    %83 = arith.truncf %82 : vector<8x32xf32> to vector<8x32xbf16>
    %cst_32 = arith.constant dense<0.000000e+00> : vector<8x32xf32>
    %84 = tpu.matmul %83, %19, %cst_32 {dimension_numbers = #tpu.dot_dimension_numbers<[1], [0], [0], [1], [0, 0, 1, 1], [], []>} : vector<8x32xbf16>, vector<32x32xbf16>, vector<8x32xf32> -> vector<8x32xf32>
    %85 = vector.broadcast %21 : vector<1x32xf32> to vector<8x32xf32>
    %86 = arith.addf %84, %85 : vector<8x32xf32>
    %87 = arith.addf %3, %86 : vector<8x32xf32>
    %cst_33 = arith.constant dense<0.000000e+00> : vector<8xf32>
    %88 = vector.multi_reduction <add>, %87, %cst_33 [1] : vector<8x32xf32> to vector<8xf32>
    %89 = vector.shape_cast %88 : vector<8xf32> to vector<8x1xf32>
    %cst_34 = arith.constant 3.200000e+01 : f32
    %90 = vector.broadcast %cst_34 : f32 to vector<8x1xf32>
    %91 = arith.divf %89, %90 : vector<8x1xf32>
    %92 = vector.broadcast %91 : vector<8x1xf32> to vector<8x32xf32>
    %93 = arith.subf %87, %92 : vector<8x32xf32>
    %94 = arith.mulf %93, %93 : vector<8x32xf32>
    %cst_35 = arith.constant dense<0.000000e+00> : vector<8xf32>
    %95 = vector.multi_reduction <add>, %94, %cst_35 [1] : vector<8x32xf32> to vector<8xf32>
    %96 = vector.shape_cast %95 : vector<8xf32> to vector<8x1xf32>
    %cst_36 = arith.constant 3.200000e+01 : f32
    %97 = vector.broadcast %cst_36 : f32 to vector<8x1xf32>
    %98 = arith.divf %96, %97 : vector<8x1xf32>
    %99 = vector.broadcast %91 : vector<8x1xf32> to vector<8x32xf32>
    %100 = arith.subf %87, %99 : vector<8x32xf32>
    %cst_37 = arith.constant 9.99999974E-6 : f32
    %101 = vector.broadcast %cst_37 : f32 to vector<8x1xf32>
    %102 = arith.addf %98, %101 : vector<8x1xf32>
    %103 = math.rsqrt %102 : vector<8x1xf32>
    %104 = vector.broadcast %103 : vector<8x1xf32> to vector<8x32xf32>
    %105 = arith.mulf %100, %104 : vector<8x32xf32>
    %c0_38 = arith.constant 0 : index
    %c6 = arith.constant 6 : index
    %c0_39 = arith.constant 0 : index
    %106 = vector.load %arg8[%c0_38, %c6, %c0_39] : memref<1x12x96xf32, #tpu.memory_space<vmem>>, vector<1x1x32xf32>
    %107 = vector.shape_cast %106 : vector<1x1x32xf32> to vector<1x32xf32>
    %108 = vector.broadcast %107 : vector<1x32xf32> to vector<8x32xf32>
    %109 = arith.mulf %105, %108 : vector<8x32xf32>
    %c0_40 = arith.constant 0 : index
    %c7 = arith.constant 7 : index
    %c0_41 = arith.constant 0 : index
    %110 = vector.load %arg8[%c0_40, %c7, %c0_41] : memref<1x12x96xf32, #tpu.memory_space<vmem>>, vector<1x1x32xf32>
    %111 = vector.shape_cast %110 : vector<1x1x32xf32> to vector<1x32xf32>
    %112 = vector.broadcast %111 : vector<1x32xf32> to vector<8x32xf32>
    %113 = arith.addf %109, %112 : vector<8x32xf32>
    %c0_42 = arith.constant 0 : index
    %c1_43 = arith.constant 1 : index
    %c0_44 = arith.constant 0 : index
    %c0_45 = arith.constant 0 : index
    %114 = vector.load %arg5[%c0_42, %c1_43, %c0_44, %c0_45] : memref<1x2x32x128xbf16, #tpu.memory_space<vmem>>, vector<1x1x32x128xbf16>
    %115 = vector.shape_cast %114 : vector<1x1x32x128xbf16> to vector<32x128xbf16>
    %c0_46 = arith.constant 0 : index
    %c2 = arith.constant 2 : index
    %c0_47 = arith.constant 0 : index
    %116 = vector.load %arg8[%c0_46, %c2, %c0_47] : memref<1x12x96xf32, #tpu.memory_space<vmem>>, vector<1x1x96xf32>
    %117 = vector.shape_cast %116 : vector<1x1x96xf32> to vector<1x96xf32>
    %118 = arith.truncf %113 : vector<8x32xf32> to vector<8x32xbf16>
    %119 = vector.extract_strided_slice %115 {offsets = [0, 0], sizes = [32, 32], strides = [1, 1]} : vector<32x128xbf16> to vector<32x32xbf16>
    %cst_48 = arith.constant dense<0.000000e+00> : vector<8x32xf32>
    %120 = tpu.matmul %118, %119, %cst_48 {dimension_numbers = #tpu.dot_dimension_numbers<[1], [0], [0], [1], [0, 0, 1, 1], [], []>} : vector<8x32xbf16>, vector<32x32xbf16>, vector<8x32xf32> -> vector<8x32xf32>
    %121 = vector.extract_strided_slice %117 {offsets = [0, 0], sizes = [1, 32], strides = [1, 1]} : vector<1x96xf32> to vector<1x32xf32>
    %122 = vector.broadcast %121 : vector<1x32xf32> to vector<8x32xf32>
    %123 = arith.addf %120, %122 : vector<8x32xf32>
    %124 = arith.truncf %4 : vector<8x32xf32> to vector<8x32xbf16>
    %125 = vector.extract_strided_slice %115 {offsets = [0, 32], sizes = [32, 64], strides = [1, 1]} : vector<32x128xbf16> to vector<32x64xbf16>
    %cst_49 = arith.constant dense<0.000000e+00> : vector<8x64xf32>
    %126 = tpu.matmul %124, %125, %cst_49 {dimension_numbers = #tpu.dot_dimension_numbers<[1], [0], [0], [1], [0, 0, 1, 1], [], []>} : vector<8x32xbf16>, vector<32x64xbf16>, vector<8x64xf32> -> vector<8x64xf32>
    %127 = vector.extract_strided_slice %117 {offsets = [0, 32], sizes = [1, 64], strides = [1, 1]} : vector<1x96xf32> to vector<1x64xf32>
    %128 = vector.broadcast %127 : vector<1x64xf32> to vector<8x64xf32>
    %129 = arith.addf %126, %128 : vector<8x64xf32>
    %130 = vector.extract_strided_slice %129 {offsets = [0, 0], sizes = [8, 32], strides = [1, 1]} : vector<8x64xf32> to vector<8x32xf32>
    %131 = vector.extract_strided_slice %129 {offsets = [0, 32], sizes = [8, 32], strides = [1, 1]} : vector<8x64xf32> to vector<8x32xf32>
    %132 = vector.extract_strided_slice %115 {offsets = [0, 96], sizes = [32, 32], strides = [1, 1]} : vector<32x128xbf16> to vector<32x32xbf16>
    %c0_50 = arith.constant 0 : index
    %c3 = arith.constant 3 : index
    %c0_51 = arith.constant 0 : index
    %133 = vector.load %arg8[%c0_50, %c3, %c0_51] : memref<1x12x96xf32, #tpu.memory_space<vmem>>, vector<1x1x32xf32>
    %134 = vector.shape_cast %133 : vector<1x1x32xf32> to vector<1x32xf32>
    %135 = vector.extract_strided_slice %123 {offsets = [0, 0], sizes = [8, 8], strides = [1, 1]} : vector<8x32xf32> to vector<8x8xf32>
    %136 = vector.extract_strided_slice %130 {offsets = [0, 0], sizes = [8, 8], strides = [1, 1]} : vector<8x32xf32> to vector<8x8xf32>
    "tpu.trace_start"() <{level = 10 : i32, message = "td,sd->ts"}> : () -> ()
    %cst_52 = arith.constant dense<0.000000e+00> : vector<8x8xf32>
    %137 = tpu.matmul %135, %136, %cst_52 {dimension_numbers = #tpu.dot_dimension_numbers<[1], [1], [0], [0], [0, 0, 1, 0], [], []>} : vector<8x8xf32>, vector<8x8xf32>, vector<8x8xf32> -> vector<8x8xf32>
    "tpu.trace_stop"() : () -> ()
    %138 = vector.broadcast %6 : vector<1x8xf32> to vector<8x8xf32>
    %139 = arith.addf %137, %138 : vector<8x8xf32>
    %cst_53 = arith.constant dense<0xFF800000> : vector<8xf32>
    %140 = vector.multi_reduction <maximumf>, %139, %cst_53 [1] : vector<8x8xf32> to vector<8xf32>
    %141 = vector.shape_cast %140 : vector<8xf32> to vector<8x1xf32>
    %142 = vector.broadcast %141 : vector<8x1xf32> to vector<8x8xf32>
    %143 = arith.subf %139, %142 : vector<8x8xf32>
    %144 = math.exp %143 : vector<8x8xf32>
    %cst_54 = arith.constant dense<0.000000e+00> : vector<8xf32>
    %145 = vector.multi_reduction <add>, %144, %cst_54 [1] : vector<8x8xf32> to vector<8xf32>
    %146 = vector.shape_cast %145 : vector<8xf32> to vector<8x1xf32>
    %147 = tpu.reciprocal %146 : vector<8x1xf32> -> vector<8x1xf32>
    %148 = vector.broadcast %147 : vector<8x1xf32> to vector<8x8xf32>
    %149 = arith.mulf %144, %148 : vector<8x8xf32>
    %150 = vector.extract_strided_slice %131 {offsets = [0, 0], sizes = [8, 8], strides = [1, 1]} : vector<8x32xf32> to vector<8x8xf32>
    %cst_55 = arith.constant dense<0.000000e+00> : vector<8x8xf32>
    %151 = tpu.matmul %149, %150, %cst_55 {dimension_numbers = #tpu.dot_dimension_numbers<[1], [0], [0], [1], [0, 0, 1, 1], [], []>} : vector<8x8xf32>, vector<8x8xf32>, vector<8x8xf32> -> vector<8x8xf32>
    %152 = vector.extract_strided_slice %123 {offsets = [0, 8], sizes = [8, 8], strides = [1, 1]} : vector<8x32xf32> to vector<8x8xf32>
    %153 = vector.extract_strided_slice %130 {offsets = [0, 8], sizes = [8, 8], strides = [1, 1]} : vector<8x32xf32> to vector<8x8xf32>
    "tpu.trace_start"() <{level = 10 : i32, message = "td,sd->ts"}> : () -> ()
    %cst_56 = arith.constant dense<0.000000e+00> : vector<8x8xf32>
    %154 = tpu.matmul %152, %153, %cst_56 {dimension_numbers = #tpu.dot_dimension_numbers<[1], [1], [0], [0], [0, 0, 1, 0], [], []>} : vector<8x8xf32>, vector<8x8xf32>, vector<8x8xf32> -> vector<8x8xf32>
    "tpu.trace_stop"() : () -> ()
    %155 = vector.broadcast %6 : vector<1x8xf32> to vector<8x8xf32>
    %156 = arith.addf %154, %155 : vector<8x8xf32>
    %cst_57 = arith.constant dense<0xFF800000> : vector<8xf32>
    %157 = vector.multi_reduction <maximumf>, %156, %cst_57 [1] : vector<8x8xf32> to vector<8xf32>
    %158 = vector.shape_cast %157 : vector<8xf32> to vector<8x1xf32>
    %159 = vector.broadcast %158 : vector<8x1xf32> to vector<8x8xf32>
    %160 = arith.subf %156, %159 : vector<8x8xf32>
    %161 = math.exp %160 : vector<8x8xf32>
    %cst_58 = arith.constant dense<0.000000e+00> : vector<8xf32>
    %162 = vector.multi_reduction <add>, %161, %cst_58 [1] : vector<8x8xf32> to vector<8xf32>
    %163 = vector.shape_cast %162 : vector<8xf32> to vector<8x1xf32>
    %164 = tpu.reciprocal %163 : vector<8x1xf32> -> vector<8x1xf32>
    %165 = vector.broadcast %164 : vector<8x1xf32> to vector<8x8xf32>
    %166 = arith.mulf %161, %165 : vector<8x8xf32>
    %167 = vector.extract_strided_slice %131 {offsets = [0, 8], sizes = [8, 8], strides = [1, 1]} : vector<8x32xf32> to vector<8x8xf32>
    %cst_59 = arith.constant dense<0.000000e+00> : vector<8x8xf32>
    %168 = tpu.matmul %166, %167, %cst_59 {dimension_numbers = #tpu.dot_dimension_numbers<[1], [0], [0], [1], [0, 0, 1, 1], [], []>} : vector<8x8xf32>, vector<8x8xf32>, vector<8x8xf32> -> vector<8x8xf32>
    %169 = vector.extract_strided_slice %123 {offsets = [0, 16], sizes = [8, 8], strides = [1, 1]} : vector<8x32xf32> to vector<8x8xf32>
    %170 = vector.extract_strided_slice %130 {offsets = [0, 16], sizes = [8, 8], strides = [1, 1]} : vector<8x32xf32> to vector<8x8xf32>
    "tpu.trace_start"() <{level = 10 : i32, message = "td,sd->ts"}> : () -> ()
    %cst_60 = arith.constant dense<0.000000e+00> : vector<8x8xf32>
    %171 = tpu.matmul %169, %170, %cst_60 {dimension_numbers = #tpu.dot_dimension_numbers<[1], [1], [0], [0], [0, 0, 1, 0], [], []>} : vector<8x8xf32>, vector<8x8xf32>, vector<8x8xf32> -> vector<8x8xf32>
    "tpu.trace_stop"() : () -> ()
    %172 = vector.broadcast %6 : vector<1x8xf32> to vector<8x8xf32>
    %173 = arith.addf %171, %172 : vector<8x8xf32>
    %cst_61 = arith.constant dense<0xFF800000> : vector<8xf32>
    %174 = vector.multi_reduction <maximumf>, %173, %cst_61 [1] : vector<8x8xf32> to vector<8xf32>
    %175 = vector.shape_cast %174 : vector<8xf32> to vector<8x1xf32>
    %176 = vector.broadcast %175 : vector<8x1xf32> to vector<8x8xf32>
    %177 = arith.subf %173, %176 : vector<8x8xf32>
    %178 = math.exp %177 : vector<8x8xf32>
    %cst_62 = arith.constant dense<0.000000e+00> : vector<8xf32>
    %179 = vector.multi_reduction <add>, %178, %cst_62 [1] : vector<8x8xf32> to vector<8xf32>
    %180 = vector.shape_cast %179 : vector<8xf32> to vector<8x1xf32>
    %181 = tpu.reciprocal %180 : vector<8x1xf32> -> vector<8x1xf32>
    %182 = vector.broadcast %181 : vector<8x1xf32> to vector<8x8xf32>
    %183 = arith.mulf %178, %182 : vector<8x8xf32>
    %184 = vector.extract_strided_slice %131 {offsets = [0, 16], sizes = [8, 8], strides = [1, 1]} : vector<8x32xf32> to vector<8x8xf32>
    %cst_63 = arith.constant dense<0.000000e+00> : vector<8x8xf32>
    %185 = tpu.matmul %183, %184, %cst_63 {dimension_numbers = #tpu.dot_dimension_numbers<[1], [0], [0], [1], [0, 0, 1, 1], [], []>} : vector<8x8xf32>, vector<8x8xf32>, vector<8x8xf32> -> vector<8x8xf32>
    %186 = vector.extract_strided_slice %123 {offsets = [0, 24], sizes = [8, 8], strides = [1, 1]} : vector<8x32xf32> to vector<8x8xf32>
    %187 = vector.extract_strided_slice %130 {offsets = [0, 24], sizes = [8, 8], strides = [1, 1]} : vector<8x32xf32> to vector<8x8xf32>
    "tpu.trace_start"() <{level = 10 : i32, message = "td,sd->ts"}> : () -> ()
    %cst_64 = arith.constant dense<0.000000e+00> : vector<8x8xf32>
    %188 = tpu.matmul %186, %187, %cst_64 {dimension_numbers = #tpu.dot_dimension_numbers<[1], [1], [0], [0], [0, 0, 1, 0], [], []>} : vector<8x8xf32>, vector<8x8xf32>, vector<8x8xf32> -> vector<8x8xf32>
    "tpu.trace_stop"() : () -> ()
    %189 = vector.broadcast %6 : vector<1x8xf32> to vector<8x8xf32>
    %190 = arith.addf %188, %189 : vector<8x8xf32>
    %cst_65 = arith.constant dense<0xFF800000> : vector<8xf32>
    %191 = vector.multi_reduction <maximumf>, %190, %cst_65 [1] : vector<8x8xf32> to vector<8xf32>
    %192 = vector.shape_cast %191 : vector<8xf32> to vector<8x1xf32>
    %193 = vector.broadcast %192 : vector<8x1xf32> to vector<8x8xf32>
    %194 = arith.subf %190, %193 : vector<8x8xf32>
    %195 = math.exp %194 : vector<8x8xf32>
    %cst_66 = arith.constant dense<0.000000e+00> : vector<8xf32>
    %196 = vector.multi_reduction <add>, %195, %cst_66 [1] : vector<8x8xf32> to vector<8xf32>
    %197 = vector.shape_cast %196 : vector<8xf32> to vector<8x1xf32>
    %198 = tpu.reciprocal %197 : vector<8x1xf32> -> vector<8x1xf32>
    %199 = vector.broadcast %198 : vector<8x1xf32> to vector<8x8xf32>
    %200 = arith.mulf %195, %199 : vector<8x8xf32>
    %201 = vector.extract_strided_slice %131 {offsets = [0, 24], sizes = [8, 8], strides = [1, 1]} : vector<8x32xf32> to vector<8x8xf32>
    %cst_67 = arith.constant dense<0.000000e+00> : vector<8x8xf32>
    %202 = tpu.matmul %200, %201, %cst_67 {dimension_numbers = #tpu.dot_dimension_numbers<[1], [0], [0], [1], [0, 0, 1, 1], [], []>} : vector<8x8xf32>, vector<8x8xf32>, vector<8x8xf32> -> vector<8x8xf32>
    %203 = tpu.concatenate %151, %168, %185, %202 in 1 : vector<8x8xf32>, vector<8x8xf32>, vector<8x8xf32>, vector<8x8xf32> -> vector<8x32xf32>
    %204 = arith.truncf %203 : vector<8x32xf32> to vector<8x32xbf16>
    %cst_68 = arith.constant dense<0.000000e+00> : vector<8x32xf32>
    %205 = tpu.matmul %204, %132, %cst_68 {dimension_numbers = #tpu.dot_dimension_numbers<[1], [0], [0], [1], [0, 0, 1, 1], [], []>} : vector<8x32xbf16>, vector<32x32xbf16>, vector<8x32xf32> -> vector<8x32xf32>
    %206 = vector.broadcast %134 : vector<1x32xf32> to vector<8x32xf32>
    %207 = arith.addf %205, %206 : vector<8x32xf32>
    %208 = arith.addf %113, %207 : vector<8x32xf32>
    %cst_69 = arith.constant dense<0.000000e+00> : vector<8xf32>
    %209 = vector.multi_reduction <add>, %208, %cst_69 [1] : vector<8x32xf32> to vector<8xf32>
    %210 = vector.shape_cast %209 : vector<8xf32> to vector<8x1xf32>
    %cst_70 = arith.constant 3.200000e+01 : f32
    %211 = vector.broadcast %cst_70 : f32 to vector<8x1xf32>
    %212 = arith.divf %210, %211 : vector<8x1xf32>
    %213 = vector.broadcast %212 : vector<8x1xf32> to vector<8x32xf32>
    %214 = arith.subf %208, %213 : vector<8x32xf32>
    %215 = arith.mulf %214, %214 : vector<8x32xf32>
    %cst_71 = arith.constant dense<0.000000e+00> : vector<8xf32>
    %216 = vector.multi_reduction <add>, %215, %cst_71 [1] : vector<8x32xf32> to vector<8xf32>
    %217 = vector.shape_cast %216 : vector<8xf32> to vector<8x1xf32>
    %cst_72 = arith.constant 3.200000e+01 : f32
    %218 = vector.broadcast %cst_72 : f32 to vector<8x1xf32>
    %219 = arith.divf %217, %218 : vector<8x1xf32>
    %220 = vector.broadcast %212 : vector<8x1xf32> to vector<8x32xf32>
    %221 = arith.subf %208, %220 : vector<8x32xf32>
    %cst_73 = arith.constant 9.99999974E-6 : f32
    %222 = vector.broadcast %cst_73 : f32 to vector<8x1xf32>
    %223 = arith.addf %219, %222 : vector<8x1xf32>
    %224 = math.rsqrt %223 : vector<8x1xf32>
    %225 = vector.broadcast %224 : vector<8x1xf32> to vector<8x32xf32>
    %226 = arith.mulf %221, %225 : vector<8x32xf32>
    %c0_74 = arith.constant 0 : index
    %c8 = arith.constant 8 : index
    %c0_75 = arith.constant 0 : index
    %227 = vector.load %arg8[%c0_74, %c8, %c0_75] : memref<1x12x96xf32, #tpu.memory_space<vmem>>, vector<1x1x32xf32>
    %228 = vector.shape_cast %227 : vector<1x1x32xf32> to vector<1x32xf32>
    %229 = vector.broadcast %228 : vector<1x32xf32> to vector<8x32xf32>
    %230 = arith.mulf %226, %229 : vector<8x32xf32>
    %c0_76 = arith.constant 0 : index
    %c9 = arith.constant 9 : index
    %c0_77 = arith.constant 0 : index
    %231 = vector.load %arg8[%c0_76, %c9, %c0_77] : memref<1x12x96xf32, #tpu.memory_space<vmem>>, vector<1x1x32xf32>
    %232 = vector.shape_cast %231 : vector<1x1x32xf32> to vector<1x32xf32>
    %233 = vector.broadcast %232 : vector<1x32xf32> to vector<8x32xf32>
    %234 = arith.addf %230, %233 : vector<8x32xf32>
    %c0_78 = arith.constant 0 : index
    %c0_79 = arith.constant 0 : index
    %c0_80 = arith.constant 0 : index
    %235 = vector.load %arg6[%c0_78, %c0_79, %c0_80] : memref<1x32x64xbf16, #tpu.memory_space<vmem>>, vector<1x32x64xbf16>
    %236 = vector.shape_cast %235 : vector<1x32x64xbf16> to vector<32x64xbf16>
    %c0_81 = arith.constant 0 : index
    %c0_82 = arith.constant 0 : index
    %c0_83 = arith.constant 0 : index
    %237 = vector.load %arg7[%c0_81, %c0_82, %c0_83] : memref<1x64x32xbf16, #tpu.memory_space<vmem>>, vector<1x64x32xbf16>
    %238 = vector.shape_cast %237 : vector<1x64x32xbf16> to vector<64x32xbf16>
    %239 = arith.truncf %234 : vector<8x32xf32> to vector<8x32xbf16>
    %cst_84 = arith.constant dense<0.000000e+00> : vector<8x64xf32>
    %240 = tpu.matmul %239, %236, %cst_84 {dimension_numbers = #tpu.dot_dimension_numbers<[1], [0], [0], [1], [0, 0, 1, 1], [], []>} : vector<8x32xbf16>, vector<32x64xbf16>, vector<8x64xf32> -> vector<8x64xf32>
    %c0_85 = arith.constant 0 : index
    %c4 = arith.constant 4 : index
    %c0_86 = arith.constant 0 : index
    %241 = vector.load %arg8[%c0_85, %c4, %c0_86] : memref<1x12x96xf32, #tpu.memory_space<vmem>>, vector<1x1x64xf32>
    %242 = vector.shape_cast %241 : vector<1x1x64xf32> to vector<1x64xf32>
    %243 = vector.broadcast %242 : vector<1x64xf32> to vector<8x64xf32>
    %244 = arith.addf %240, %243 : vector<8x64xf32>
    %cst_87 = arith.constant 5.000000e-01 : f32
    %245 = vector.broadcast %cst_87 : f32 to vector<8x64xf32>
    %246 = arith.mulf %245, %244 : vector<8x64xf32>
    %cst_88 = arith.constant 0.707106769 : f32
    %247 = vector.broadcast %cst_88 : f32 to vector<8x64xf32>
    %248 = arith.mulf %244, %247 : vector<8x64xf32>
    %249 = math.erf %248 : vector<8x64xf32>
    %cst_89 = arith.constant 1.000000e+00 : f32
    %250 = vector.broadcast %cst_89 : f32 to vector<8x64xf32>
    %251 = arith.addf %250, %249 : vector<8x64xf32>
    %252 = arith.mulf %246, %251 : vector<8x64xf32>
    %253 = arith.truncf %252 : vector<8x64xf32> to vector<8x64xbf16>
    %cst_90 = arith.constant dense<0.000000e+00> : vector<8x32xf32>
    %254 = tpu.matmul %253, %238, %cst_90 {dimension_numbers = #tpu.dot_dimension_numbers<[1], [0], [0], [1], [0, 0, 1, 1], [], []>} : vector<8x64xbf16>, vector<64x32xbf16>, vector<8x32xf32> -> vector<8x32xf32>
    %c0_91 = arith.constant 0 : index
    %c5 = arith.constant 5 : index
    %c0_92 = arith.constant 0 : index
    %255 = vector.load %arg8[%c0_91, %c5, %c0_92] : memref<1x12x96xf32, #tpu.memory_space<vmem>>, vector<1x1x32xf32>
    %256 = vector.shape_cast %255 : vector<1x1x32xf32> to vector<1x32xf32>
    %257 = vector.broadcast %256 : vector<1x32xf32> to vector<8x32xf32>
    %258 = arith.addf %254, %257 : vector<8x32xf32>
    %259 = arith.addf %234, %258 : vector<8x32xf32>
    %cst_93 = arith.constant dense<0.000000e+00> : vector<8xf32>
    %260 = vector.multi_reduction <add>, %259, %cst_93 [1] : vector<8x32xf32> to vector<8xf32>
    %261 = vector.shape_cast %260 : vector<8xf32> to vector<8x1xf32>
    %cst_94 = arith.constant 3.200000e+01 : f32
    %262 = vector.broadcast %cst_94 : f32 to vector<8x1xf32>
    %263 = arith.divf %261, %262 : vector<8x1xf32>
    %264 = vector.broadcast %263 : vector<8x1xf32> to vector<8x32xf32>
    %265 = arith.subf %259, %264 : vector<8x32xf32>
    %266 = arith.mulf %265, %265 : vector<8x32xf32>
    %cst_95 = arith.constant dense<0.000000e+00> : vector<8xf32>
    %267 = vector.multi_reduction <add>, %266, %cst_95 [1] : vector<8x32xf32> to vector<8xf32>
    %268 = vector.shape_cast %267 : vector<8xf32> to vector<8x1xf32>
    %cst_96 = arith.constant 3.200000e+01 : f32
    %269 = vector.broadcast %cst_96 : f32 to vector<8x1xf32>
    %270 = arith.divf %268, %269 : vector<8x1xf32>
    %271 = vector.broadcast %263 : vector<8x1xf32> to vector<8x32xf32>
    %272 = arith.subf %259, %271 : vector<8x32xf32>
    %cst_97 = arith.constant 9.99999974E-6 : f32
    %273 = vector.broadcast %cst_97 : f32 to vector<8x1xf32>
    %274 = arith.addf %270, %273 : vector<8x1xf32>
    %275 = math.rsqrt %274 : vector<8x1xf32>
    %276 = vector.broadcast %275 : vector<8x1xf32> to vector<8x32xf32>
    %277 = arith.mulf %272, %276 : vector<8x32xf32>
    %c0_98 = arith.constant 0 : index
    %c10 = arith.constant 10 : index
    %c0_99 = arith.constant 0 : index
    %278 = vector.load %arg8[%c0_98, %c10, %c0_99] : memref<1x12x96xf32, #tpu.memory_space<vmem>>, vector<1x1x32xf32>
    %279 = vector.shape_cast %278 : vector<1x1x32xf32> to vector<1x32xf32>
    %280 = vector.broadcast %279 : vector<1x32xf32> to vector<8x32xf32>
    %281 = arith.mulf %277, %280 : vector<8x32xf32>
    %c0_100 = arith.constant 0 : index
    %c11 = arith.constant 11 : index
    %c0_101 = arith.constant 0 : index
    %282 = vector.load %arg8[%c0_100, %c11, %c0_101] : memref<1x12x96xf32, #tpu.memory_space<vmem>>, vector<1x1x32xf32>
    %283 = vector.shape_cast %282 : vector<1x1x32xf32> to vector<1x32xf32>
    %284 = vector.broadcast %283 : vector<1x32xf32> to vector<8x32xf32>
    %285 = arith.addf %281, %284 : vector<8x32xf32>
    %c0_102 = arith.constant 0 : index
    %c0_103 = arith.constant 0 : index
    %286 = vector.load %arg10[%c0_102, %c0_103] : memref<8x32xf32, #tpu.memory_space<vmem>>, vector<8x32xf32>
    tpu.vector_store %arg10[%c0_102, %c0_103], %285 {strides = array<i32>} : memref<8x32xf32, #tpu.memory_space<vmem>>, vector<8x32xf32>,
    %c1_i32 = arith.constant 1 : i32
    %287 = arith.cmpi eq, %arg1, %c1_i32 : i32
    %288 = arith.extui %287 : i1 to i32
    %c0_i32_104 = arith.constant 0 : i32
    %289 = arith.cmpi ne, %288, %c0_i32_104 : i32
    scf.if %289 {
      %c0_105 = arith.constant 0 : index
      %c0_106 = arith.constant 0 : index
      %290 = vector.load %arg9[%c0_105, %c0_106] : memref<8x32xf32, #tpu.memory_space<vmem>>, vector<8x32xf32>
      tpu.vector_store %arg9[%c0_105, %c0_106], %285 {strides = array<i32>} : memref<8x32xf32, #tpu.memory_space<vmem>>, vector<8x32xf32>,
    } else {
    }
    return
  }
  func.func @transform_0(%arg0: i32, %arg1: i32) -> (i32, i32) {
    %c0_i32 = arith.constant 0 : i32
    %c0_i32_0 = arith.constant 0 : i32
    return %arg0, %c0_i32 : i32, i32
  }
  func.func @transform_1(%arg0: i32, %arg1: i32) -> (i32, i32) {
    %c0_i32 = arith.constant 0 : i32
    %c0_i32_0 = arith.constant 0 : i32
    return %arg0, %c0_i32 : i32, i32
  }
  func.func @transform_2(%arg0: i32, %arg1: i32) -> (i32, i32, i32) {
    %c0_i32 = arith.constant 0 : i32
    %c0_i32_0 = arith.constant 0 : i32
    %c0_i32_1 = arith.constant 0 : i32
    return %arg0, %c0_i32, %c0_i32_0 : i32, i32, i32
  }
  func.func @transform_3(%arg0: i32, %arg1: i32) -> (i32, i32, i32, i32) {
    %c0_i32 = arith.constant 0 : i32
    %c0_i32_0 = arith.constant 0 : i32
    %c0_i32_1 = arith.constant 0 : i32
    %c0_i32_2 = arith.constant 0 : i32
    return %arg1, %c0_i32, %c0_i32_0, %c0_i32_1 : i32, i32, i32, i32
  }
  func.func @transform_4(%arg0: i32, %arg1: i32) -> (i32, i32, i32) {
    %c0_i32 = arith.constant 0 : i32
    %c0_i32_0 = arith.constant 0 : i32
    %c0_i32_1 = arith.constant 0 : i32
    return %arg1, %c0_i32, %c0_i32_0 : i32, i32, i32
  }
  func.func @transform_5(%arg0: i32, %arg1: i32) -> (i32, i32, i32) {
    %c0_i32 = arith.constant 0 : i32
    %c0_i32_0 = arith.constant 0 : i32
    %c0_i32_1 = arith.constant 0 : i32
    return %arg1, %c0_i32, %c0_i32_0 : i32, i32, i32
  }
  func.func @transform_6(%arg0: i32, %arg1: i32) -> (i32, i32, i32) {
    %c0_i32 = arith.constant 0 : i32
    %c0_i32_0 = arith.constant 0 : i32
    %c0_i32_1 = arith.constant 0 : i32
    return %arg1, %c0_i32, %c0_i32_0 : i32, i32, i32
  }
  func.func @transform_7(%arg0: i32, %arg1: i32) -> (i32, i32) {
    %c0_i32 = arith.constant 0 : i32
    %c0_i32_0 = arith.constant 0 : i32
    return %arg0, %c0_i32 : i32, i32
  }
}

</mosaic_0001>

<bundles_post_ra>
// kernel: decoder_forward.1
= control target key start
LH: loop header
LB: loop body
LE: loop exit
PB: predicated region body
PF: predicated region fallthrough
CT: control target
= control target key end

     0   :  { %s3445_s0 = inlined_call_operand.vmem [shape: f32[16,32], index: 0, kind: input, shape index: {}]   ;;  %s3446_s1 = inlined_call_operand.vmem [shape: f32[16,32], index: 1, kind: input, shape index: {}]   ;;  %s3447_s2 = inlined_call_operand.vmem [shape: f32[2,1,8], index: 2, kind: input, shape index: {}]   ;;  %s3448_s3 = inlined_call_operand.vmem [shape: bf16[2,2,32,128], index: 3, kind: input, shape index: {}]   ;;  %s3449_s4 = inlined_call_operand.vmem [shape: bf16[2,32,64], index: 4, kind: input, shape index: {}]   ;;  %s3450_s5 = inlined_call_operand.vmem [shape: bf16[2,64,32], index: 5, kind: input, shape index: {}]   ;;  %s3451_s6 = inlined_call_operand.vmem [shape: f32[2,12,96], index: 6, kind: input, shape index: {}]   ;;  %s3452_s7 = inlined_call_operand.hbm [shape: f32[16,32], index: 7, kind: output, shape index: {}]  }
   0x1   :  { %3463 = sst [smem:[#allocation15_spill]] %s3452_s7 }
   0x2   :  { %12 = vsyncpa [#allocation4], 0 }
   0x3   :  { %14 = vsyncpa [#allocation4 + $0x1], 0  ;;  %s3021_s24 = smov 0   ;;  %s3023_s25 = smov 0  }
   0x4   :  { %s3025_s26 = smov 0   ;;  %s3027_s27 = smov 0  }
   0x5   :  { %s3029_s28 = smov 0   ;;  %s3031_s29 = smov 0  }
   0x6   :  { %s3033_s30 = smov 0   ;;  %s3035_s8 = smov 0  }
   0x7 LB: > { %3464 = sst [smem:[#allocation6_spill]] %s2933_s24  ;;  %s2450_s9 = sadd.s32 4294967295, %s2961_s8   ;;  %s2961_s8 = sphi %s3035_s8, %s20_s8   ;;  %s2957_s30 = sphi %s3033_s30, %s3485_s30   ;;  %s2953_s29 = sphi %s3031_s29, %s3484_s29   ;;  %s2949_s28 = sphi %s3029_s28, %s3483_s28   ;;  %s2945_s27 = sphi %s3027_s27, %s3482_s27   ;;  %s2941_s26 = sphi %s3025_s26, %s3481_s26   ;;  %s2937_s25 = sphi %s3023_s25, %s3487_s25   ;;  %s2933_s24 = sphi %s3021_s24, %s3486_s24  }
   0x8   : > { %3465 = sst [smem:[#allocation7_spill]] %s2941_s26  ;;  %s2451_s10 = sadd.s32 4294967294, %s2961_s8  }
   0x9   : > { %3466 = sst [smem:[#allocation8_spill]] %s2953_s29  ;;  %s29_s11 = sadd.s32 1, %s2953_s29 }
   0xa   : > { %3467 = sst [smem:[#allocation9_spill]] %s2957_s30  ;;  %p30_p0 = scmp.ge.s32.totalorder %s29_s11, 2 }
   0xb   : > { %3468 = sst [smem:[#allocation10_spill]] %s2961_s8  ;;  %s32_s12 = sadd.s32 1, %s2957_s30 }
   0xc   : > { %p231_p1 = scmp.ne.s32.totalorder %s2941_s26, %s2937_s25  ;;  %p232_p2 = scmp.eq.s32.totalorder %s2450_s9, 3 }
   0xd   : > { %s3489_s11 = smov (%p30_p0, %s29_s11), 0  ;;  %s3491_s12 = smov (!%p30_p0, %s32_s12), %s2957_s30 }
   0xe   : > { %3469 = sst [smem:[#allocation11_spill]] %s3489_s11  ;;  %p3070_p3 = por %p232_p2, %p231_p1 }
   0xf   : > { %p237_p4 = scmp.ne.s32.totalorder %s2937_s25, %s2933_s24  ;;  %p34_p5 = scmp.ge.s32.totalorder %s3491_s12, 2 }
  0x10   : > { %p238_p6 = scmp.eq.s32.totalorder %s2451_s10, 3  ;;  %p2454_p7 = scmp.ge.s32.totalorder %s2961_s8, 1 }
  0x11   : > { %p308_p8 = scmp.lt.s32.totalorder %s2961_s8, 5  ;;  %s3493_s12 = smov (%p34_p5, %s3491_s12), 0 }
  0x12   : > { %3471 = sst [smem:[#allocation12_spill]] %s3493_s12  ;;  %p3080_p9 = por %p238_p6, %p237_p4 }
  0x13   : > { %p309_p10 = pnand %p2454_p7, %p308_p8  ;;  %s218_s15 = ssub.s32 %s2957_s30, %s3493_s12 }
  0x14   : > { %s3472_s14 = scalar_select %p3080_p9, 1, 0 }
  0x15   : > { %s221_s16 = sadd.s32 1, %s2941_s26  ;;  %p219_p11 = scmp.eq.s32.totalorder %s218_s15, 0 }
  0x16   : > { %3473 = sst [smem:[#allocation13_spill]] %s3472_s14  ;;  %312 = sbr.rel (%p309_p10) target bundleno = 4824 (0x12d8), region = 48 }
  0x17   : > { %s3088_s17 = scalar_select %p219_p11, %s2941_s26, %s221_s16  }
  0x18   : > { %s3455_s18 = sand.u32 (!%p309_p10), 1, %s2937_s25   ;;  %p366_p12 = scmp.lt.s32.totalorder (!%p309_p10), %s2949_s28, 1 }
  0x19   : > { %3474 = sst [smem:[#allocation14_spill]] %s3088_s17  ;;  %s3094_s19 = sshll.u32 (!%p309_p10), %s3455_s18, 3 }
  0x1a   : > { %p377_p13 = scmp.lt.s32.totalorder (!%p309_p10), %s2945_s27, 1  ;;  %p2466_p0 = scmp.ne.s32.totalorder (!%p309_p10), %s2945_s27, 0 }
  0x1d   : > { %s3098_s20 = scalar_select %p366_p12, %s2949_s28, 1 }
  0x1e   : > { %s378_s21 = scalar_select %p377_p13, %s2945_s27, 1 }
  0x1f   : > { %s2456_s22 = sshll.u32 %s3098_s20, 3  ;;  %s376_s10 = scalar_lea.vmem %s3447_s2, %s3098_s20  ;;  %vm403_vm0 = vcmask (!%p2466_p0), 261120  }
  0x20   : > { %s369_s12 = scalar_lea.vmem %s3445_s0, %s2456_s22  ;;  %s3112_s18 = scalar_lea.vmem %s3446_s1, %s2456_s22 }
  0x21   : > { %s2530_s29 = sshll.u32 %s378_s21, 5  ;;  %s2531_s17 = sshll.u32 %s378_s21, 4  ;;  %v402_v0 = vld [vmem:[%s369_s12] sm:$0xff] (!%p2466_p0) }
  0x22   : > { %s3117_s24 = scalar_lea.vmem %s3448_s3, %s2530_s29  ;;  %s3122_s23 = scalar_lea.vmem %s3449_s4, %s2531_s17  ;;  %404 = vst.msk [vmem:[#allocation2] sm:$0xff] (!%p2466_p0), %vm403_vm0, %v402_v0 }
  0x23   : > { %s3127_s16 = scalar_lea.vmem %s3450_s5, %s2530_s29  ;;  %s3132_s22 = scalar_lea.vmem %s3451_s6, %s2531_s17 }
  0x24   : > { %s365_s21 = scalar_lea.vmem [#allocation3], %s3094_s19  ;;  %401 = sbr.rel (%p2466_p0) target bundleno = 43 (0x2b), region = 52 }
  0x2b PF: > { %v3137_v1 = vld [vmem:[%s3117_s24] sm:$0xff]   ;;  %v2963_v2 = vmov 0.0   ;;  %v3143_v3 = vld [vmem:[%s3117_s24 + $0x8] sm:$0xff]   ;;  %vm2964_vm1 = vmmov 0   ;;  %vm430_vm2 = vcmask 261120   ;;  %s2965_s7 = smov 64  }
  0x2c   : > { %2589 = vmatprep.subr.bf16.mxu0 %v2963_v2  ;;  %2602 = vmatprep.subr.mxu1 %v2963_v2  ;;  %v3147_v4 = vld [vmem:[#allocation2] sm:$0xff]  ;;  %s2966_s26 = smov 96   ;;  %s2967_s29 = smov 88   ;;  %vm478_vm3 = vcmask 64512   ;;  %vm1148_vm4 = vcmask 130048   ;;  %vm1150_vm5 = vcmask 195584  }
  0x2d   : > { %2590 = vmatpush3.bf16.msra.mxu0 %v3137_v1  ;;  %2593 = vmatprep.mubr.msk.bf16.mxu0 %vm2964_vm1, %v2963_v2  ;;  %v412_v5 = vpack.c.bf16 %v3147_v4, %v3147_v4  ;;  %v2467_v6 = vld [vmem:[%s3132_s22] ss:$0 sm:$0xff]  ;;  %s2968_s8 = smov 120   ;;  %s2969_s12 = smov 80   ;;  %vm2221_vm6 = vcmask 523264  }
  0x2e   : > { %2591 = vmatprep.subr.bf16.mxu0 %v2963_v2  ;;  %2604 = vmatprep.mubr.msk.f32.mxu1 %vm2964_vm1, %v2963_v2  ;;  %s2970_s14 = smov 72   ;;  %s2971_s17 = smov 112  }
  0x2f   : > { %s2972_s9 = smov 104   ;;  %s2973_s15 = smov 56  }
  0x30   : > { %s2974_s30 = smov 40   ;;  %s2975_s11 = smov 48  }
  0x31   : > { %2592 = vmatpush3.bf16.msra.mxu0 %v3143_v3  ;;  %p2525_p1 = scmp.ne.s32.totalorder %s2945_s27, 1 }
  0x32   : > { %2597 = vmatprep.subr.mxu0 %v2963_v2 }
  0x34   : > { %2594 = vmatmul.mubr.msk.bf16.vlgmr.msra.gmra.mrb[0].mxu0 %vm430_vm2, %v412_v5 }
  0x35   : > { %2599 = vmatprep.mubr.msk.f32.mxu0 %vm2964_vm1, %v2963_v2 }
 0x107   : > { %v468_v7 = vpop.f32.mrb[0].mxu0 }
 0x108   : > { %v3160_v8 = vadd.f32 %v2467_v6, %v468_v7  ;;  %v2595_v9 = vpop.f32.mrb[1].mxu0 }
 0x109   : > { %v471_v10 = vpop.f32.mrb[2].mxu0 }
 0x10a   : > { %564 = vrot.lane.b32.xlu1 %v3160_v8, %s2965_s7  ;;  %476 = vrot.lane.b32.xlu0 %v3160_v8, %s2966_s26  ;;  %v2596_v11 = vpop.f32.mrb[3].mxu0  ;;  %s2976_s7 = smov 32  }
 0x10e   : > { %642 = vrot.lane.b32.xlu1 %v3160_v8, %s2967_s29 }
 0x112   : > { %640 = vrot.lane.b32.xlu1 %v3160_v8, %s2968_s8 }
 0x116   : > { %807 = vrot.lane.b32.xlu1 %v3160_v8, %s2969_s12 }
 0x17c   : > { %v565_v12 = vpop.permute.xlu1 %564  ;;  %v477_v13 = vpop.permute.xlu0 %476 }
 0x17d   : > { %2598 = vmatpush3.xpose.msk.msra.mxu0 %vm478_vm3, %v477_v13  ;;  %2603 = vmatpush3.msra.mxu1 %v565_v12 }
 0x17e   : > { %2607 = vmatprep.subr.mxu1 %v2963_v2  ;;  %2612 = vmatprep.subr.mxu0 %v2963_v2 }
 0x180   : > { %2600 = vmatmul.mubr.msk.f32.vlgmr.msra.gmra.mrb[4].mxu0 %vm478_vm3, %v3160_v8  ;;  %v643_v22 = vpop.permute.xlu1 %642 }
 0x181   : > { %2614 = vmatprep.mubr.msk.f32.mxu0 %vm2964_vm1, %v2963_v2 }
 0x184   : > { %v641_v23 = vpop.permute.xlu1 %640 }
 0x188   : > { %v808_v24 = vpop.permute.xlu1 %807 }
 0x253   : > { %v549_v14 = vpop.f32.mrb[4].mxu0 }
 0x254   : > { %v2601_v15 = vpop.f32.mrb[5].mxu0  ;;  %v553_v16 = vsel %vm478_vm3, %v549_v14, -inf }
 0x255   : > { %554 = vmax.xlane.f32.xlu0 %v553_v16 }
 0x26b   : > { %972 = vrot.lane.b32.xlu0 %v3160_v8, %s2970_s14 }
 0x2e2   : > { %v555_v17 = vpop.xlane.xlu0 %554 }
 0x2e3   : > { %v556_v18 = vsub.f32 %v549_v14, %v555_v17 }
 0x2e5   : > { %v557_v19 = vmul.f32 1.442695, %v556_v18 }
 0x2e6   : > { %v973_v29 = vpop.permute.xlu0 %972 }
 0x2e7   : > { %2827 = vpow2.f32 %v557_v19 }
 0x2f1   : > { %v2828_v20 = vpop.eup %2827 }
 0x2f2   : > { %v559_v21 = vsel %vm478_vm3, %v2828_v20, 0.0 }
 0x2f3   : > { %560 = vadd.xlane.f32.xlu1 %v559_v21 }
 0x304   : > { %805 = vrot.lane.b32.xlu1 %v3160_v8, %s2971_s17 }
 0x308   : > { %970 = vrot.lane.b32.xlu1 %v3160_v8, %s2972_s9 }
 0x380   : > { %v561_v25 = vpop.xlane.xlu1 %560 }
 0x381   : > { %2829 = vrcp.f32 %v561_v25 }
 0x384   : > { %v806_v28 = vpop.permute.xlu1 %805 }
 0x388   : > { %v971_v30 = vpop.permute.xlu1 %970 }
 0x38b   : > { %v2830_v26 = vpop.eup %2829 }
 0x38c   : > { %v563_v27 = vmul.f32 %v2830_v26, %v2828_v20 }
 0x38e   : > { %2605 = vmatmul.mubr.msk.f32.vlgmr.msra.gmra.mrb[0].mxu1 %vm478_vm3, %v563_v27 }
 0x38f   : > { %2608 = vmatpush3.xpose.msk.msra.mxu1 %vm478_vm3, %v643_v22  ;;  %2609 = vmatprep.mubr.msk.f32.mxu1 %vm2964_vm1, %v2963_v2  ;;  %v2483_v22 = vld [vmem:[%s3132_s22 + $0x1] ss:$0 sm:$0xff] }
 0x390   : > { %2617 = vmatprep.subr.mxu1 %v2963_v2 }
 0x392   : > { %2610 = vmatmul.mubr.msk.f32.vlgmr.msra.gmra.mrb[2].mxu1 %vm478_vm3, %v641_v23 }
 0x393   : > { %2618 = vmatpush3.xpose.msk.msra.mxu1 %vm478_vm3, %v808_v24  ;;  %2619 = vmatprep.mubr.msk.f32.mxu1 %vm2964_vm1, %v2963_v2 }
 0x394   : > { %2627 = vmatprep.subr.mxu1 %v2963_v2 }
 0x396   : > { %2620 = vmatmul.mubr.msk.f32.vlgmr.msra.gmra.mrb[4].mxu1 %vm478_vm3, %v806_v28 }
 0x397   : > { %2628 = vmatpush3.xpose.msk.msra.mxu1 %vm478_vm3, %v973_v29  ;;  %2629 = vmatprep.mubr.msk.f32.mxu1 %vm2964_vm1, %v2963_v2 }
 0x398   : > { %2637 = vmatprep.subr.bf16.mxu1 %v2963_v2 }
 0x39a   : > { %2630 = vmatmul.mubr.msk.f32.vlgmr.msra.gmra.mrb[6].mxu1 %vm478_vm3, %v971_v30  ;;  %v3247_v30 = vld [vmem:[%s3117_s24 + $0x10] sm:$0xff]  }
 0x39b   : > { %2641 = vmatprep.mubr.msk.bf16.mxu1 %vm2964_vm1, %v2963_v2 }
 0x461   : > { %v3204_v31 = vpop.f32.mrb[0].mxu1 }
 0x462   : > { %v2606_v32 = vpop.f32.mrb[1].mxu1 }
 0x465   : > { %v714_v33 = vpop.f32.mrb[2].mxu1 }
 0x466   : > { %v2611_v34 = vpop.f32.mrb[3].mxu1  ;;  %v718_v35 = vsel %vm478_vm3, %v714_v33, -inf }
 0x467   : > { %719 = vmax.xlane.f32.xlu1 %v718_v35 }
 0x469   : > { %v879_v36 = vpop.f32.mrb[4].mxu1 }
 0x46a   : > { %v2621_v37 = vpop.f32.mrb[5].mxu1  ;;  %v883_v38 = vsel %vm478_vm3, %v879_v36, -inf }
 0x46b   : > { %884 = vmax.xlane.f32.xlu0 %v883_v38  ;;  %v2491_v37 = vld [vmem:[%s3132_s22 + $0x2] ss:$0 sm:$0xff] }
 0x46d   : > { %v1044_v39 = vpop.f32.mrb[6].mxu1 }
 0x46e   : > { %v2631_v40 = vpop.f32.mrb[7].mxu1  ;;  %v1048_v41 = vsel %vm478_vm3, %v1044_v39, -inf }
 0x46f   : > { %1049 = vmax.xlane.f32.xlu1 %v1048_v41  ;;  %v406_v40 = vld [vmem:[%s3112_s18] sm:$0xff] }
 0x480   : > { %729 = vrot.lane.b32.xlu1 %v3160_v8, %s2973_s15  ;;  %s2977_s15 = smov 8  }
 0x4f4   : > { %v720_v42 = vpop.xlane.xlu1 %719 }
 0x4f5   : > { %v721_v43 = vsub.f32 %v714_v33, %v720_v42 }
 0x4f7   : > { %v722_v44 = vmul.f32 1.442695, %v721_v43  ;;  %v1299_v43 = vpack.c.bf16 %v406_v40, %v406_v40 }
 0x4f8   : > { %v885_v45 = vpop.xlane.xlu0 %884 }
 0x4f9   : > { %2831 = vpow2.f32 %v722_v44  ;;  %v886_v46 = vsub.f32 %v879_v36, %v885_v45  ;;  %v2485_v45 = vld [vmem:[%s3132_s22 + $0x6] ss:$0 sm:$0xff] }
 0x4fb   : > { %v887_v47 = vmul.f32 1.442695, %v886_v46 }
 0x4fc   : > { %v1050_v48 = vpop.xlane.xlu1 %1049 }
 0x4fd   : > { %2833 = vpow2.f32 %v887_v47  ;;  %v1051_v49 = vsub.f32 %v1044_v39, %v1050_v48  ;;  %v2486_v47 = vld [vmem:[%s3132_s22 + $0x7] ss:$0 sm:$0xff] }
 0x4ff   : > { %v1052_v50 = vmul.f32 1.442695, %v1051_v49 }
 0x500   : > { %v730_v51 = vpop.permute.xlu1 %729 }
 0x501   : > { %2835 = vpow2.f32 %v1052_v50  ;;  %2613 = vmatpush3.msra.mxu0 %v730_v51 }
 0x502   : > { %2622 = vmatprep.subr.mxu0 %v2963_v2 }
 0x503   : > { %v2832_v52 = vpop.eup %2831 }
 0x504   : > { %v724_v53 = vsel %vm478_vm3, %v2832_v52, 0.0 }
 0x505   : > { %725 = vadd.xlane.f32.xlu1 %v724_v53 }
 0x507   : > { %v2834_v54 = vpop.eup %2833 }
 0x508   : > { %v889_v55 = vsel %vm478_vm3, %v2834_v54, 0.0 }
 0x509   : > { %890 = vadd.xlane.f32.xlu1 %v889_v55 }
 0x50b   : > { %v2836_v56 = vpop.eup %2835 }
 0x50c   : > { %v1054_v57 = vsel %vm478_vm3, %v2836_v56, 0.0 }
 0x50d   : > { %1055 = vadd.xlane.f32.xlu0 %v1054_v57 }
 0x51a   : > { %1059 = vrot.lane.b32.xlu1 %v3160_v8, %s2974_s30  ;;  %s2978_s30 = smov 16  }
 0x51e   : > { %1157 = vrot.lane.b32.xlu1 %v3137_v1, %s2976_s7 }
 0x523   : > { %894 = vrot.lane.b32.xlu0 %v3160_v8, %s2975_s11  ;;  %s2979_s11 = smov 24  }
 0x592   : > { %v726_v58 = vpop.xlane.xlu1 %725 }
 0x593   : > { %2837 = vrcp.f32 %v726_v58 }
 0x596   : > { %v891_v59 = vpop.xlane.xlu1 %890 }
 0x597   : > { %2839 = vrcp.f32 %v891_v59 }
 0x59a   : > { %v1056_v60 = vpop.xlane.xlu0 %1055  ;;  %v1060_v6 = vpop.permute.xlu1 %1059 }
 0x59b   : > { %2841 = vrcp.f32 %v1056_v60 }
 0x59d   : > { %v2838_v61 = vpop.eup %2837 }
 0x59e   : > { %v728_v62 = vmul.f32 %v2838_v61, %v2832_v52  ;;  %v895_v63 = vpop.permute.xlu0 %894  ;;  %v1158_v9 = vpop.permute.xlu1 %1157 }
 0x59f   : > { %2638 = vmatpush3.bf16.msra.mxu1 %v1158_v9 }
 0x5a0   : > { %2615 = vmatmul.mubr.msk.f32.vlgmr.msra.gmra.mrb[6].mxu0 %vm478_vm3, %v728_v62  ;;  %2639 = vmatprep.subr.bf16.mxu1 %v2963_v2 }
 0x5a1   : > { %v2840_v0 = vpop.eup %2839  ;;  %2623 = vmatpush3.msra.mxu0 %v895_v63  ;;  %2624 = vmatprep.mubr.msk.f32.mxu0 %vm2964_vm1, %v2963_v2 }
 0x5a2   : > { %v893_v5 = vmul.f32 %v2840_v0, %v2834_v54  ;;  %2632 = vmatprep.subr.mxu0 %v2963_v2 }
 0x5a4   : > { %2625 = vmatmul.mubr.msk.f32.vlgmr.msra.gmra.mrb[8].mxu0 %vm478_vm3, %v893_v5 }
 0x5a5   : > { %v2842_v7 = vpop.eup %2841  ;;  %2633 = vmatpush3.msra.mxu0 %v1060_v6  ;;  %2634 = vmatprep.mubr.msk.f32.mxu0 %vm2964_vm1, %v2963_v2 }
 0x5a6   : > { %v1058_v8 = vmul.f32 %v2842_v7, %v2836_v56  ;;  %2645 = vmatprep.subr.bf16.mxu0 %v2963_v2 }
 0x5a8   : > { %2635 = vmatmul.mubr.msk.f32.vlgmr.msra.gmra.mrb[10].mxu0 %vm478_vm3, %v1058_v8  ;;  %v2496_v8 = vld [vmem:[%s376_s10] ss:$0 sm:$0xff] }
 0x5a9   : > { %2649 = vmatprep.mubr.msk.bf16.mxu0 %vm2964_vm1, %v2963_v2  ;;  %2646 = vmatpush3.bf16.msra.mxu0 %v3247_v30 }
 0x5aa   : > { %2647 = vmatprep.subr.bf16.mxu0 %v2963_v2 }
 0x673   : > { %v801_v10 = vpop.f32.mrb[6].mxu0 }
 0x674   : > { %1136 = vrot.lane.b32.xlu0 %v801_v10, %s2977_s15  ;;  %v2616_v11 = vpop.f32.mrb[7].mxu0 }
 0x677   : > { %v966_v12 = vpop.f32.mrb[8].mxu0 }
 0x678   : > { %1140 = vrot.lane.b32.xlu1 %v966_v12, %s2978_s30  ;;  %v2626_v13 = vpop.f32.mrb[9].mxu0 }
 0x67b   : > { %v1131_v14 = vpop.f32.mrb[10].mxu0 }
 0x67c   : > { %1159 = vrot.lane.b32.xlu1 %v3143_v3, %s2976_s7  ;;  %1144 = vrot.lane.b32.xlu0 %v1131_v14, %s2979_s11  ;;  %v2636_v1 = vpop.f32.mrb[11].mxu0 }
 0x6e6   : > { %v1137_v15 = vpop.permute.xlu0 %1136 }
 0x6e7   : > { %v1147_v17 = vsel %vm478_vm3, %v3204_v31, %v1137_v15  ;;  %v3254_v31 = vld [vmem:[%s3117_s24 + $0x18] sm:$0xff]  }
 0x6e8   : > { %2648 = vmatpush3.bf16.msra.mxu0 %v3254_v31 }
 0x6e9   : > { %2661 = vmatprep.subr.mxu0 %v2963_v2 }
 0x6ea   : > { %v1141_v16 = vpop.permute.xlu1 %1140 }
 0x6eb   : > { %v1149_v18 = vsel %vm1148_vm4, %v1147_v17, %v1141_v16 }
 0x6ee   : > { %v1160_v19 = vpop.permute.xlu1 %1159  ;;  %v1145_v20 = vpop.permute.xlu0 %1144 }
 0x6ef   : > { %v1151_v21 = vsel %vm1150_vm5, %v1149_v18, %v1145_v20  ;;  %2640 = vmatpush3.bf16.msra.mxu1 %v1160_v19 }
 0x6f0   : > { %v1152_v3 = vpack.c.bf16 %v1151_v21, %v1151_v21  ;;  %2653 = vmatprep.subr.bf16.mxu1 %v2963_v2 }
 0x6f2   : > { %2642 = vmatmul.mubr.msk.bf16.vlgmr.msra.gmra.mrb[8].mxu1 %vm430_vm2, %v1152_v3 }
 0x6f3   : > { %2657 = vmatprep.mubr.msk.bf16.mxu1 %vm2964_vm1, %v2963_v2 }
 0x7c5   : > { %v1200_v23 = vpop.f32.mrb[8].mxu1 }
 0x7c6   : > { %v1201_v24 = vadd.f32 %v2483_v22, %v1200_v23  ;;  %v2643_v25 = vpop.f32.mrb[9].mxu1 }
 0x7c7   : > { %v1203_v26 = vpop.f32.mrb[10].mxu1 }
 0x7c8   : > { %v2644_v27 = vpop.f32.mrb[11].mxu1  ;;  %v1206_v28 = vadd.f32 %v1201_v24, %v3147_v4 }
 0x7ca   : > { %v1207_v29 = vsel %vm430_vm2, %v1206_v28, 0.0 }
 0x7cb   : > { %1208 = vadd.xlane.f32.xlu0 %v1207_v29 }
 0x7e1   : > { %1300 = vrot.lane.b32.xlu0 %v3247_v30, %s2966_s26 }
 0x7e5   : > { %1307 = vrot.lane.b32.xlu0 %v2491_v37, %s2966_s26 }
 0x858   : > { %v1209_v4 = vpop.xlane.xlu0 %1208 }
 0x859   : > { %v1211_v32 = vmul.f32 0.03125, %v1209_v4 }
 0x85b   : > { %v1212_v33 = vsub.f32 %v1206_v28, %v1211_v32 }
 0x85c   : > { %v1301_v36 = vpop.permute.xlu0 %1300 }
 0x85d   : > { %v1213_v34 = vmul.f32 %v1212_v33, %v1212_v33  ;;  %2654 = vmatpush3.bf16.msra.mxu1 %v1301_v36 }
 0x85e   : > { %2655 = vmatprep.subr.bf16.mxu1 %v2963_v2 }
 0x85f   : > { %v1214_v35 = vsel %vm430_vm2, %v1213_v34, 0.0 }
 0x860   : > { %1215 = vadd.xlane.f32.xlu1 %v1214_v35  ;;  %v1308_v51 = vpop.permute.xlu0 %1307 }
 0x871   : > { %1302 = vrot.lane.b32.xlu1 %v3254_v31, %s2966_s26 }
 0x8ed   : > { %v1216_v38 = vpop.xlane.xlu1 %1215 }
 0x8ee   : > { %v1217_v39 = vmul.f32 0.03125, %v1216_v38 }
 0x8f0   : > { %v1218_v41 = vadd.f32 1e-05, %v1217_v39 }
 0x8f1   : > { %v1303_v42 = vpop.permute.xlu1 %1302 }
 0x8f2   : > { %2843 = vrsqrt.f32 %v1218_v41  ;;  %2656 = vmatpush3.bf16.msra.mxu1 %v1303_v42 }
 0x8f3   : > { %2671 = vmatprep.subr.mxu1 %v2963_v2 }
 0x8f5   : > { %2658 = vmatmul.mubr.msk.bf16.vlgmr.msra.gmra.mrb[12].mxu1 %vm430_vm2, %v1299_v43 }
 0x8f6   : > { %2673 = vmatprep.mubr.msk.f32.mxu1 %vm2964_vm1, %v2963_v2 }
 0x8fc   : > { %v2844_v44 = vpop.eup %2843 }
 0x8fd   : > { %v1220_v46 = vmul.f32 %v2844_v44, %v1212_v33 }
 0x8ff   : > { %v1226_v48 = vmul.f32 %v2485_v45, %v1220_v46 }
 0x901   : > { %v3271_v49 = vadd.f32 %v2486_v47, %v1226_v48 }
 0x903   : > { %v1239_v50 = vpack.c.bf16 %v3271_v49, %v3271_v49 }
 0x905   : > { %2650 = vmatmul.mubr.msk.bf16.vlgmr.msra.gmra.mrb[12].mxu0 %vm430_vm2, %v1239_v50 }
 0x906   : > { %2663 = vmatprep.mubr.msk.f32.mxu0 %vm2964_vm1, %v2963_v2 }
 0x9c8   : > { %v1347_v52 = vpop.f32.mrb[12].mxu1 }
 0x9c9   : > { %v3278_v53 = vadd.f32 %v1347_v52, %v1308_v51  ;;  %v2659_v54 = vpop.f32.mrb[13].mxu1 }
 0x9ca   : > { %v1350_v55 = vpop.f32.mrb[14].mxu1 }
 0x9cb   : > { %1525 = vrot.lane.b32.xlu1 %v3278_v53, %s2968_s8  ;;  %v2660_v56 = vpop.f32.mrb[15].mxu1  ;;  %2662 = vmatpush3.xpose.msk.msra.mxu0 %vm478_vm3, %v3278_v53 }
 0x9cc   : > { %2666 = vmatprep.subr.mxu0 %v2963_v2 }
 0x9cf   : > { %1690 = vrot.lane.b32.xlu1 %v3278_v53, %s2971_s17 }
 0x9d3   : > { %1855 = vrot.lane.b32.xlu1 %v3278_v53, %s2972_s9 }
 0x9d8   : > { %v1293_v57 = vpop.f32.mrb[12].mxu0 }
 0x9d9   : > { %v1294_v58 = vadd.f32 %v2491_v37, %v1293_v57  ;;  %v2651_v59 = vpop.f32.mrb[13].mxu0 }
 0x9da   : > { %v1296_v60 = vpop.f32.mrb[14].mxu0 }
 0x9db   : > { %1523 = vrot.lane.b32.xlu0 %v1294_v58, %s2968_s8  ;;  %v2652_v61 = vpop.f32.mrb[15].mxu0  ;;  %2664 = vmatmul.mubr.msk.f32.vlgmr.msra.gmra.mrb[16].mxu0 %vm478_vm3, %v1294_v58 }
 0x9dc   : > { %2668 = vmatprep.mubr.msk.f32.mxu0 %vm2964_vm1, %v2963_v2 }
 0x9df   : > { %1688 = vrot.lane.b32.xlu0 %v1294_v58, %s2971_s17 }
 0x9e3   : > { %1853 = vrot.lane.b32.xlu0 %v1294_v58, %s2972_s9 }
 0xa3d   : > { %v1526_v62 = vpop.permute.xlu1 %1525 }
 0xa3e   : > { %2672 = vmatpush3.xpose.msk.msra.mxu1 %vm478_vm3, %v1526_v62 }
 0xa3f   : > { %2681 = vmatprep.subr.mxu1 %v2963_v2 }
 0xa41   : > { %v1691_v63 = vpop.permute.xlu1 %1690 }
 0xa45   : > { %v1856_v6 = vpop.permute.xlu1 %1855 }
 0xa4d   : > { %v1524_v0 = vpop.permute.xlu0 %1523 }
 0xa4e   : > { %2674 = vmatmul.mubr.msk.f32.vlgmr.msra.gmra.mrb[16].mxu1 %vm478_vm3, %v1524_v0 }
 0xa4f   : > { %2682 = vmatpush3.xpose.msk.msra.mxu1 %vm478_vm3, %v1691_v63  ;;  %2683 = vmatprep.mubr.msk.f32.mxu1 %vm2964_vm1, %v2963_v2 }
 0xa50   : > { %2691 = vmatprep.subr.mxu1 %v2963_v2 }
 0xa51   : > { %v1689_v5 = vpop.permute.xlu0 %1688 }
 0xa52   : > { %2684 = vmatmul.mubr.msk.f32.vlgmr.msra.gmra.mrb[18].mxu1 %vm478_vm3, %v1689_v5 }
 0xa53   : > { %2692 = vmatpush3.xpose.msk.msra.mxu1 %vm478_vm3, %v1856_v6  ;;  %2693 = vmatprep.mubr.msk.f32.mxu1 %vm2964_vm1, %v2963_v2 }
 0xa54   : > { %2701 = vmatprep.subr.bf16.mxu1 %v2963_v2 }
 0xa55   : > { %v1854_v7 = vpop.permute.xlu0 %1853 }
 0xa56   : > { %2694 = vmatmul.mubr.msk.f32.vlgmr.msra.gmra.mrb[20].mxu1 %vm478_vm3, %v1854_v7 }
 0xa57   : > { %2705 = vmatprep.mubr.msk.bf16.mxu1 %vm2964_vm1, %v2963_v2 }
 0xaae   : > { %v1432_v9 = vpop.f32.mrb[16].mxu0 }
 0xaaf   : > { %v1433_v10 = vadd.f32 %v2496_v8, %v1432_v9  ;;  %v2665_v11 = vpop.f32.mrb[17].mxu0 }
 0xab1   : > { %v1436_v12 = vsel %vm478_vm3, %v1433_v10, -inf }
 0xab2   : > { %1437 = vmax.xlane.f32.xlu1 %v1436_v12 }
 0xb21   : > { %v1597_v13 = vpop.f32.mrb[16].mxu1 }
 0xb22   : > { %v1598_v14 = vadd.f32 %v2496_v8, %v1597_v13  ;;  %v2675_v1 = vpop.f32.mrb[17].mxu1 }
 0xb24   : > { %v1601_v15 = vsel %vm478_vm3, %v1598_v14, -inf }
 0xb25   : > { %1602 = vmax.xlane.f32.xlu0 %v1601_v15  ;;  %v1762_v16 = vpop.f32.mrb[18].mxu1 }
 0xb26   : > { %v1763_v17 = vadd.f32 %v2496_v8, %v1762_v16  ;;  %v2685_v18 = vpop.f32.mrb[19].mxu1 }
 0xb28   : > { %v1766_v19 = vsel %vm478_vm3, %v1763_v17, -inf }
 0xb29   : > { %1767 = vmax.xlane.f32.xlu0 %v1766_v19  ;;  %v1927_v20 = vpop.f32.mrb[20].mxu1 }
 0xb2a   : > { %v1928_v21 = vadd.f32 %v2496_v8, %v1927_v20  ;;  %v2695_v3 = vpop.f32.mrb[21].mxu1 }
 0xb2c   : > { %v1931_v22 = vsel %vm478_vm3, %v1928_v21, -inf }
 0xb2d   : > { %1932 = vmax.xlane.f32.xlu1 %v1931_v22 }
 0xb3e   : > { %1612 = vrot.lane.b32.xlu1 %v3278_v53, %s2967_s29 }
 0xb3f   : > { %v1438_v23 = vpop.xlane.xlu1 %1437 }
 0xb40   : > { %v1439_v24 = vsub.f32 %v1433_v10, %v1438_v23 }
 0xb42   : > { %v1440_v25 = vmul.f32 1.442695, %v1439_v24 }
 0xb44   : > { %2845 = vpow2.f32 %v1440_v25 }
 0xb4e   : > { %v2846_v26 = vpop.eup %2845 }
 0xb4f   : > { %v1442_v27 = vsel %vm478_vm3, %v2846_v26, 0.0 }
 0xb50   : > { %1443 = vadd.xlane.f32.xlu0 %v1442_v27  ;;  %v2821_v27 = vld [vmem:[%s3122_s23] sm:$0xff]  }
 0xb66   : > { %1447 = vrot.lane.b32.xlu0 %v3278_v53, %s2966_s26 }
 0xbb2   : > { %v1603_v28 = vpop.xlane.xlu0 %1602 }
 0xbb3   : > { %v1604_v29 = vsub.f32 %v1598_v14, %v1603_v28  ;;  %v2822_v28 = vld [vmem:[%s3122_s23 + $0x8] sm:$0xff]  }
 0xbb5   : > { %v1605_v4 = vmul.f32 1.442695, %v1604_v29 }
 0xbb6   : > { %v1768_v32 = vpop.xlane.xlu0 %1767 }
 0xbb7   : > { %2847 = vpow2.f32 %v1605_v4  ;;  %v1769_v33 = vsub.f32 %v1763_v17, %v1768_v32 }
 0xbb9   : > { %v1770_v34 = vmul.f32 1.442695, %v1769_v33  ;;  %v2511_v33 = vld [vmem:[%s3132_s22 + $0x8] ss:$0 sm:$0xff] }
 0xbba   : > { %v1933_v35 = vpop.xlane.xlu1 %1932 }
 0xbbb   : > { %2849 = vpow2.f32 %v1770_v34  ;;  %v1934_v36 = vsub.f32 %v1928_v21, %v1933_v35  ;;  %v2512_v35 = vld [vmem:[%s3132_s22 + $0x9] ss:$0 sm:$0xff] }
 0xbbd   : > { %v1935_v37 = vmul.f32 1.442695, %v1934_v36 }
 0xbbe   : > { %v1613_v48 = vpop.permute.xlu1 %1612 }
 0xbbf   : > { %2851 = vpow2.f32 %v1935_v37 }
 0xbc1   : > { %v2848_v38 = vpop.eup %2847 }
 0xbc2   : > { %v1607_v39 = vsel %vm478_vm3, %v2848_v38, 0.0 }
 0xbc3   : > { %1608 = vadd.xlane.f32.xlu1 %v1607_v39  ;;  %v2823_v39 = vld [vmem:[%s3127_s16] sm:$0xff]  }
 0xbc5   : > { %v2850_v40 = vpop.eup %2849 }
 0xbc6   : > { %v1772_v41 = vsel %vm478_vm3, %v2850_v40, 0.0 }
 0xbc7   : > { %1773 = vadd.xlane.f32.xlu0 %v1772_v41  ;;  %v2825_v41 = vld [vmem:[%s3127_s16 + $0x10] sm:$0xff]  }
 0xbc9   : > { %v2852_v42 = vpop.eup %2851 }
 0xbca   : > { %v1937_v43 = vsel %vm478_vm3, %v2852_v42, 0.0 }
 0xbcb   : > { %1938 = vadd.xlane.f32.xlu1 %v1937_v43  ;;  %v2513_v43 = vld [vmem:[%s3132_s22 + $0x4] ss:$0 sm:$0xff] }
 0xbdc   : > { %1777 = vrot.lane.b32.xlu1 %v3278_v53, %s2969_s12 }
 0xbdd   : > { %1942 = vrot.lane.b32.xlu0 %v3278_v53, %s2970_s14  ;;  %v1444_v44 = vpop.xlane.xlu0 %1443 }
 0xbde   : > { %2853 = vrcp.f32 %v1444_v44 }
 0xbe0   : > { %2038 = vrot.lane.b32.xlu1 %v3247_v30, %s2976_s7 }
 0xbe1   : > { %v1448_v45 = vpop.permute.xlu0 %1447 }
 0xbe2   : > { %2667 = vmatpush3.msra.mxu0 %v1448_v45 }
 0xbe3   : > { %2676 = vmatprep.subr.mxu0 %v2963_v2 }
 0xbe8   : > { %v2854_v46 = vpop.eup %2853 }
 0xbe9   : > { %v1446_v47 = vmul.f32 %v2854_v46, %v2846_v26 }
 0xbeb   : > { %2669 = vmatmul.mubr.msk.f32.vlgmr.msra.gmra.mrb[18].mxu0 %vm478_vm3, %v1446_v47 }
 0xbec   : > { %2677 = vmatpush3.msra.mxu0 %v1613_v48  ;;  %2678 = vmatprep.mubr.msk.f32.mxu0 %vm2964_vm1, %v2963_v2 }
 0xbed   : > { %2686 = vmatprep.subr.mxu0 %v2963_v2 }
 0xc50   : > { %v1609_v50 = vpop.xlane.xlu1 %1608 }
 0xc51   : > { %2855 = vrcp.f32 %v1609_v50 }
 0xc54   : > { %v1774_v51 = vpop.xlane.xlu0 %1773 }
 0xc55   : > { %2857 = vrcp.f32 %v1774_v51 }
 0xc58   : > { %v1939_v30 = vpop.xlane.xlu1 %1938  ;;  %v1943_v57 = vpop.permute.xlu0 %1942 }
 0xc59   : > { %2859 = vrcp.f32 %v1939_v30 }
 0xc5b   : > { %v2856_v52 = vpop.eup %2855 }
 0xc5c   : > { %v1611_v53 = vmul.f32 %v2856_v52, %v2848_v38  ;;  %v1778_v54 = vpop.permute.xlu1 %1777 }
 0xc5e   : > { %2679 = vmatmul.mubr.msk.f32.vlgmr.msra.gmra.mrb[20].mxu0 %vm478_vm3, %v1611_v53 }
 0xc5f   : > { %v2858_v55 = vpop.eup %2857  ;;  %2687 = vmatpush3.msra.mxu0 %v1778_v54  ;;  %2688 = vmatprep.mubr.msk.f32.mxu0 %vm2964_vm1, %v2963_v2 }
 0xc60   : > { %v1776_v56 = vmul.f32 %v2858_v55, %v2850_v40  ;;  %2696 = vmatprep.subr.mxu0 %v2963_v2  ;;  %v2039_v60 = vpop.permute.xlu1 %2038  ;;  %v2824_v40 = vld [vmem:[%s3127_s16 + $0x8] sm:$0xff]   ;;  %v2517_v55 = vld [vmem:[%s3132_s22 + $0x5] ss:$0 sm:$0xff] }
 0xc61   : > { %2702 = vmatpush3.bf16.msra.mxu1 %v2039_v60 }
 0xc62   : > { %2689 = vmatmul.mubr.msk.f32.vlgmr.msra.gmra.mrb[22].mxu0 %vm478_vm3, %v1776_v56  ;;  %2703 = vmatprep.subr.bf16.mxu1 %v2963_v2 }
 0xc63   : > { %v2860_v58 = vpop.eup %2859  ;;  %2697 = vmatpush3.msra.mxu0 %v1943_v57  ;;  %2698 = vmatprep.mubr.msk.f32.mxu0 %vm2964_vm1, %v2963_v2 }
 0xc64   : > { %v1941_v59 = vmul.f32 %v2860_v58, %v2852_v42  ;;  %2709 = vmatprep.subr.bf16.mxu0 %v2963_v2  ;;  %v2826_v42 = vld [vmem:[%s3127_s16 + $0x18] sm:$0xff]  }
 0xc66   : > { %2699 = vmatmul.mubr.msk.f32.vlgmr.msra.gmra.mrb[24].mxu0 %vm478_vm3, %v1941_v59 }
 0xc67   : > { %2713 = vmatprep.mubr.msk.bf16.mxu0 %vm2964_vm1, %v2963_v2  ;;  %2710 = vmatpush3.bf16.msra.mxu0 %v2821_v27 }
 0xc68   : > { %2711 = vmatprep.subr.bf16.mxu0 %v2963_v2 }
 0xc6b   : > { %2712 = vmatpush3.bf16.msra.mxu0 %v2822_v28 }
 0xcbe   : > { %v1519_v61 = vpop.f32.mrb[18].mxu0 }
 0xcbf   : > { %v2670_v62 = vpop.f32.mrb[19].mxu0 }
 0xd31   : > { %v1684_v63 = vpop.f32.mrb[20].mxu0 }
 0xd32   : > { %2019 = vrot.lane.b32.xlu0 %v1684_v63, %s2977_s15  ;;  %v2680_v0 = vpop.f32.mrb[21].mxu0 }
 0xd35   : > { %v1849_v5 = vpop.f32.mrb[22].mxu0 }
 0xd36   : > { %2023 = vrot.lane.b32.xlu1 %v1849_v5, %s2978_s30  ;;  %v2690_v6 = vpop.f32.mrb[23].mxu0 }
 0xd39   : > { %v2014_v7 = vpop.f32.mrb[24].mxu0 }
 0xd3a   : > { %2040 = vrot.lane.b32.xlu1 %v3254_v31, %s2976_s7  ;;  %2027 = vrot.lane.b32.xlu0 %v2014_v7, %s2979_s11  ;;  %v2700_v8 = vpop.f32.mrb[25].mxu0  ;;  %v2509_v31 = vld [vmem:[%s3132_s22 + $0x3] ss:$0 sm:$0xff] }
 0xda4   : > { %v2020_v9 = vpop.permute.xlu0 %2019 }
 0xda5   : > { %v2030_v11 = vsel %vm478_vm3, %v1519_v61, %v2020_v9 }
 0xda8   : > { %v2024_v10 = vpop.permute.xlu1 %2023 }
 0xda9   : > { %v2031_v12 = vsel %vm1148_vm4, %v2030_v11, %v2024_v10  ;;  %v2523_v11 = vld [vmem:[%s3132_s22 + $0xa] ss:$0 sm:$0xff] }
 0xdac   : > { %v2041_v13 = vpop.permute.xlu1 %2040  ;;  %v2028_v14 = vpop.permute.xlu0 %2027 }
 0xdad   : > { %v2032_v1 = vsel %vm1150_vm5, %v2031_v12, %v2028_v14  ;;  %2704 = vmatpush3.bf16.msra.mxu1 %v2041_v13  ;;  %v2524_v13 = vld [vmem:[%s3132_s22 + $0xb] ss:$0 sm:$0xff] }
 0xdae   : > { %v2033_v15 = vpack.c.bf16 %v2032_v1, %v2032_v1  ;;  %2717 = vmatprep.subr.bf16.mxu1 %v2963_v2 }
 0xdb0   : > { %2706 = vmatmul.mubr.msk.bf16.vlgmr.msra.gmra.mrb[24].mxu1 %vm430_vm2, %v2033_v15 }
 0xdb1   : > { %2725 = vmatprep.mubr.msk.bf16.mxu1 %vm2964_vm1, %v2963_v2  ;;  %2718 = vmatpush3.bf16.msra.mxu1 %v2823_v39 }
 0xdb2   : > { %2719 = vmatprep.subr.bf16.mxu1 %v2963_v2 }
 0xdb5   : > { %2720 = vmatpush3.bf16.msra.mxu1 %v2824_v40 }
 0xdb6   : > { %2721 = vmatprep.subr.bf16.mxu1 %v2963_v2 }
 0xdb9   : > { %2722 = vmatpush3.bf16.msra.mxu1 %v2825_v41 }
 0xdba   : > { %2723 = vmatprep.subr.bf16.mxu1 %v2963_v2 }
 0xdbd   : > { %2724 = vmatpush3.bf16.msra.mxu1 %v2826_v42 }
 0xe83   : > { %v2081_v16 = vpop.f32.mrb[24].mxu1 }
 0xe84   : > { %v2082_v17 = vadd.f32 %v2509_v31, %v2081_v16  ;;  %v2707_v18 = vpop.f32.mrb[25].mxu1 }
 0xe85   : > { %v2084_v19 = vpop.f32.mrb[26].mxu1 }
 0xe86   : > { %v2708_v20 = vpop.f32.mrb[27].mxu1  ;;  %v2087_v21 = vadd.f32 %v2082_v17, %v3271_v49 }
 0xe88   : > { %v2088_v3 = vsel %vm430_vm2, %v2087_v21, 0.0 }
 0xe89   : > { %2089 = vadd.xlane.f32.xlu0 %v2088_v3 }
 0xf16   : > { %v2090_v22 = vpop.xlane.xlu0 %2089 }
 0xf17   : > { %v2091_v23 = vmul.f32 0.03125, %v2090_v22 }
 0xf19   : > { %v2092_v24 = vsub.f32 %v2087_v21, %v2091_v23 }
 0xf1b   : > { %v2093_v25 = vmul.f32 %v2092_v24, %v2092_v24 }
 0xf1d   : > { %v2094_v26 = vsel %vm430_vm2, %v2093_v25, 0.0 }
 0xf1e   : > { %2095 = vadd.xlane.f32.xlu1 %v2094_v26 }
 0xfab   : > { %v2096_v49 = vpop.xlane.xlu1 %2095 }
 0xfac   : > { %v2097_v29 = vmul.f32 0.03125, %v2096_v49 }
 0xfae   : > { %v2098_v4 = vadd.f32 1e-05, %v2097_v29 }
 0xfb0   : > { %2861 = vrsqrt.f32 %v2098_v4 }
 0xfba   : > { %v2862_v32 = vpop.eup %2861 }
 0xfbb   : > { %v2100_v34 = vmul.f32 %v2862_v32, %v2092_v24 }
 0xfbd   : > { %v2106_v36 = vmul.f32 %v2511_v33, %v2100_v34 }
 0xfbf   : > { %v2112_v37 = vadd.f32 %v2512_v35, %v2106_v36 }
 0xfc1   : > { %v2125_v38 = vpack.c.bf16 %v2112_v37, %v2112_v37 }
 0xfc3   : > { %2714 = vmatmul.mubr.msk.bf16.vlgmr.msra.gmra.mrb[28].mxu0 %vm430_vm2, %v2125_v38 }
0x1096   : > { %v2180_v44 = vpop.f32.mrb[28].mxu0 }
0x1097   : > { %v2181_v45 = vadd.f32 %v2513_v43, %v2180_v44  ;;  %v2715_v46 = vpop.f32.mrb[29].mxu0 }
0x1098   : > { %v2183_v47 = vpop.f32.mrb[30].mxu0 }
0x1099   : > { %v2187_v48 = vmul.f32 0.70710677, %v2181_v45  ;;  %v2716_v50 = vpop.f32.mrb[31].mxu0  ;;  %v2186_v30 = vmul.f32 0.5, %v2181_v45 }
0x109b   : > { %2863 = verf.f32 %v2187_v48 }
0x10a5   : > { %v2864_v51 = vpop.eup %2863 }
0x10a6   : > { %v2189_v52 = vadd.f32 1.0, %v2864_v51 }
0x10a8   : > { %v2190_v53 = vmul.f32 %v2189_v52, %v2186_v30 }
0x10aa   : > { %v2191_v54 = vpack.c.bf16 %v2190_v53, %v2190_v53 }
0x10ac   : > { %2726 = vmatmul.mubr.msk.bf16.vlgmr.msra.gmra.mrb[28].mxu1 %vm2221_vm6, %v2191_v54 }
0x117f   : > { %v2259_v2 = vpop.f32.mrb[28].mxu1 }
0x1180   : > { %v2260_v56 = vadd.f32 %v2517_v55, %v2259_v2  ;;  %v2727_v57 = vpop.f32.mrb[29].mxu1 }
0x1181   : > { %v2262_v58 = vpop.f32.mrb[30].mxu1 }
0x1182   : > { %v2728_v59 = vpop.f32.mrb[31].mxu1  ;;  %v2265_v60 = vadd.f32 %v2260_v56, %v2112_v37 }
0x1184   : > { %v2266_v61 = vsel %vm430_vm2, %v2265_v60, 0.0 }
0x1185   : > { %2267 = vadd.xlane.f32.xlu0 %v2266_v61 }
0x1212   : > { %v2268_v62 = vpop.xlane.xlu0 %2267 }
0x1213   : > { %v2269_v63 = vmul.f32 0.03125, %v2268_v62 }
0x1215   : > { %v2270_v0 = vsub.f32 %v2265_v60, %v2269_v63 }
0x1217   : > { %v2271_v5 = vmul.f32 %v2270_v0, %v2270_v0 }
0x1219   : > { %v2272_v6 = vsel %vm430_vm2, %v2271_v5, 0.0 }
0x121a   : > { %2273 = vadd.xlane.f32.xlu0 %v2272_v6 }
0x12a7   : > { %v2274_v7 = vpop.xlane.xlu0 %2273 }
0x12a8   : > { %v2275_v8 = vmul.f32 0.03125, %v2274_v7 }
0x12aa   : > { %v2276_v9 = vadd.f32 1e-05, %v2275_v8 }
0x12ac   : > { %2865 = vrsqrt.f32 %v2276_v9 }
0x12b6   : > { %v2866_v10 = vpop.eup %2865 }
0x12b7   : > { %v2278_v12 = vmul.f32 %v2866_v10, %v2270_v0  ;;  %2295 = sbr.rel (%p2525_p1) target bundleno = 4798 (0x12be), region = 56 }
0x12b9   : > { %v2284_v14 = vmul.f32 %v2523_v11, %v2278_v12 }
0x12bb   : > { %v2290_v1 = vadd.f32 %v2524_v13, %v2284_v14 }
0x12bd   : > { %2291 = vst.msk [vmem:[#allocation2] sm:$0xff] %vm430_vm2, %v2290_v1  ;;  %2296 = vst.msk [vmem:[%s365_s21] sm:$0xff] (!%p2525_p1), %vm430_vm2, %v2290_v1 }
0x12be PF: > { %s2527_s20 = sshll.u32 %s2949_s28, 7  ;;  %s3475_s16 = sld [smem:[#allocation15_spill]] }
0x12bf   : > { %s2311_s26 = sshll.u32 %s365_s21, 4  ;;  %s3476_s27 = sand.u32 1, %s2937_s25   ;;  %s2312_s26 = int_to_ptr.vmem [resolvable:$true] %s2311_s26 }
0x12c0   : > { %s2298_s29 = scalar_lea.sflag [#allocation4], %s3476_s27  ;;  %s2867_s8 = scalar_lea.vmem %s2312_s26, 128 }
0x12c1   : > { %p2868_p2 = scmp.ne.s32.totalorder %s2312_s26, %s2867_s8  ;;  %s2980_s12 = smov [#allocation3]  }
0x12c2   : > { %s2871_s14 = sshll.u32 %s2980_s12, 4  ;;  %s2872_s14 = int_to_ptr.vmem [resolvable:$false] %s2871_s14 }
0x12c3   : > { %p2869_p4 = pnand %p2868_p2, %p3070_p3  ;;  %s2873_s17 = scalar_lea.vmem %s2872_s14, 256 }
0x12c4   : > { %s3394_s22 = scalar_lea.hbm %s3475_s16, %s2527_s20  ;;  %p2874_p6 = scmp.lt.s32.totalorder %s2312_s26, %s2872_s14 }
0x12c5   : > { %p2870_p5 = pneg %p2869_p4  ;;  %p2875_p7 = scmp.lt.s32.totalorder %s2873_s17, %s2867_s8 }
0x12c7   : > { %p2876_p8 = por %p2875_p7, %p2874_p6 }
0x12c9   : > { %p2877_p10 = pnand %p2876_p8, %p2870_p5 }
0x12cb   : > { %2880 = shalt.err (!%p2877_p10)
}
0x12cc   : > { %s2881_s28 = scalar_lea.hbm %s3394_s22, 128  ;;  %s2885_s9 = scalar_lea.hbm %s3475_s16, 256 }
0x12cd   : > { %p2882_p11 = scmp.ne.s32.totalorder %s3394_s22, %s2881_s28  ;;  %p2886_p0 = scmp.lt.u32.totalorder %s3394_s22, %s3475_s16 }
0x12ce   : > { %p2887_p1 = scmp.lt.u32.totalorder %s2885_s9, %s2881_s28  ;;  %p2889_p4 = scmp.lt.u32.totalorder %s2881_s28, %s3394_s22 }
0x12cf   : > { %p2883_p12 = pnand %p2882_p11, %p3070_p3 }
0x12d0   : > { %p2888_p2 = por %p2887_p1, %p2886_p0 }
0x12d1   : > { %p2884_p13 = pneg %p2883_p12 }
0x12d2   : > { %p2890_p5 = por %p2889_p4, %p2888_p2 }
0x12d4   : > { %p2891_p6 = pnand %p2890_p5, %p2884_p13 }
0x12d6   : > { %2894 = shalt.err (!%p2891_p6)
}
0x12d7   : > { %2729 = dma.vmem_to_hbm [thread:$0]  (%p3070_p3), %s2312_s26, 128, %s3394_s22, %s2298_s29  }
0x12d8 PF: > { %s3477_s30 = sld [smem:[#allocation10_spill]]  ;;  %s3478_s11 = sld [smem:[#allocation6_spill]] }
0x12de   : > { %p2735_p7 = scmp.ge.s32.totalorder %s3477_s30, 2  ;;  %s2323_s18 = sand.u32 1, %s3478_s11  }
0x12df   : > { %s2324_s20 = scalar_lea.sflag [#allocation4], %s2323_s18 }
0x12e0   : > { %p2732_p8 = pnand %p2735_p7, %p3080_p9 }
0x12e2   : > { %2928 = dma.done.wait (!%p2732_p8), %s2324_s20, 128  }
0x12e3   : > { %2930 = vsyncadd (!%p2732_p8), %s2324_s20, 4294967168  ;;  %s20_s8 = sadd.s32 1, %s3477_s30   ;;  %s3480_s10 = sld [smem:[#allocation7_spill]] }
0x12e4   : > { %p17_p10 = scmp.ge.s32.totalorder %s20_s8, 6   ;;  %s3481_s26 = sld [smem:[#allocation14_spill]] }
0x12e5   : > { %s3482_s27 = sld [smem:[#allocation8_spill]]  ;;  %s3483_s28 = sld [smem:[#allocation9_spill]] }
0x12e6   : > { %s3484_s29 = sld [smem:[#allocation11_spill]]  ;;  %s3485_s30 = sld [smem:[#allocation12_spill]] }
0x12e7   : > { %s3486_s24 = smov %s2937_s25  ;;  %19 = sbr.rel (!%p17_p10) target bundleno = 7 (0x7), region = 110 }
0x12e9   : > { %s3487_s25 = smov %s3480_s10 }
0x12ee   :  { %2329 = vsyncpa [#allocation4], 1 }
0x12ef   :  { %2331 = vsyncpa [#allocation4 + $0x1], 1 }

</bundles_post_ra>
